<compile_context>
chip_gen: v7x
topology: tpu7x:2x2x1
jax: 0.10.0
libtpu: 0.0.40
codegen_flags: <defaults>
</compile_context>

<pallas_src>
import numpy as np
import jax
import jax.numpy as jnp
from jax.experimental import pallas as pl
from jax.experimental.pallas import tpu as pltpu

N_LAYER = 3
BN_EPS = 1e-5
LANE = 128


# ----------------------------------------------------------------------------
# Pallas kernel: the whole forward pass hot path
# ----------------------------------------------------------------------------
def cy2c_kernel(x_ref, a_edge_ref, a_cyc_ref, pool_ref, invn_ref,
                w_emb_ref, b_emb_ref,
                w_l1_ref, w_conv_ref, b_conv_ref, gamma_ref, beta_ref,
                b_conv2_ref, gamma2_ref, beta2_ref,
                w_lin_ref, b_lin_ref,
                out_ref):
    f32 = jnp.float32
    bf16 = jnp.bfloat16
    Hp = w_emb_ref.shape[1]

    a_edge = a_edge_ref[...]                 # [N, N]  bf16
    a_cyc = a_cyc_ref[...]                   # [N, N]  bf16
    pool = pool_ref[...]                     # [G, N]  bf16
    invn = invn_ref[...]                     # [1, N]  f32 (row of 1/N)

    def bn_relu(h, gamma, beta):
        # training-mode BatchNorm1d (biased variance) + ReLU.
        # Batch stats via MXU row-reduction (kept in f32 for precision).
        mu = jnp.dot(invn, h, preferred_element_type=f32)        # [1, Hp]
        ex2 = jnp.dot(invn, h * h, preferred_element_type=f32)   # [1, Hp]
        var = ex2 - mu * mu
        hn = (h - mu) * jax.lax.rsqrt(var + BN_EPS)
        return jnp.maximum(hn * gamma + beta, 0.0)

    # x_0 = dropout(emb(x))   (dropout_ratio = 0.0 -> identity)
    x0 = jnp.dot(x_ref[...], w_emb_ref[...],
                 preferred_element_type=f32) + b_emb_ref[...]    # [N, Hp] f32

    # Layer-1 weight matmuls of both branches fused (they share x0):
    #   x0 @ [w_conv[0] | w_conv2]  ->  [N, 2*Hp], then split lanes.
    xw_both = jnp.dot(x0.astype(bf16), w_l1_ref[...],
                      preferred_element_type=f32)
    xw_a0 = xw_both[:, :Hp]
    xw_b0 = xw_both[:, Hp:]

    pooled = []

    # --- branch A: n_layer GCNConv(edge_index, edge_attr) + BN + ReLU + res --
    x = x0
    for i in range(N_LAYER):
        if i == 0:
            xw = xw_a0
        else:
            xw = jnp.dot(x.astype(bf16), w_conv_ref[i - 1],
                         preferred_element_type=f32)
        h = jnp.dot(a_edge, xw.astype(bf16),
                    preferred_element_type=f32) + b_conv_ref[pl.ds(i, 1), :]
        xa = bn_relu(h, gamma_ref[pl.ds(i, 1), :], beta_ref[pl.ds(i, 1), :])
        x = xa + x                                   # mid_drop = 0.0 -> identity
        pooled.append(jnp.dot(pool, x.astype(bf16),
                              preferred_element_type=f32))

    # --- branch B: 1 GCNConv(cycle_index) + BN + ReLU + residual -------------
    h = jnp.dot(a_cyc, xw_b0.astype(bf16),
                preferred_element_type=f32) + b_conv2_ref[...]
    xb = bn_relu(h, gamma2_ref[...], beta2_ref[...]) + x0
    pooled.append(jnp.dot(pool, xb.astype(bf16), preferred_element_type=f32))

    # --- out = lin1(concat(a, dim=1)): one wide K = 4*Hp contraction ---------
    cat = jnp.concatenate(pooled, axis=1).astype(bf16)           # [G, 4*Hp]
    out_ref[...] = jnp.dot(cat, w_lin_ref[...],
                           preferred_element_type=f32) + b_lin_ref[...]


# ----------------------------------------------------------------------------
# Wrapper: lane-padding, bf16 casts, operand fusion, pallas_call
# ----------------------------------------------------------------------------
def _round_up(n, m):
    return ((n + m - 1) // m) * m


def _pad_last(a, target):
    pad = target - a.shape[-1]
    if pad <= 0:
        return a
    widths = [(0, 0)] * (a.ndim - 1) + [(0, pad)]
    return jnp.pad(a, widths)


def cy2c_forward(x, a_edge, a_cyc, pool_mat, params):
    f32, bf16 = jnp.float32, jnp.bfloat16
    N, in_dim = x.shape
    G = pool_mat.shape[0]
    H = params["w_emb"].shape[1]
    out_dim = params["w_lin"].shape[1]
    NL = N_LAYER

    INp = _round_up(in_dim, LANE)
    Hp = _round_up(H, LANE)
    OUTp = _round_up(out_dim, LANE)

    # -- zero-pad lanes (exact no-op through the math; padded BN lanes stay 0)
    w_emb = jnp.zeros((INp, Hp), f32).at[:in_dim, :H].set(params["w_emb"])
    b_emb = _pad_last(params["b_emb"], Hp)
    w_conv = jnp.zeros((NL, Hp, Hp), f32).at[:, :H, :H].set(params["w_conv"])
    w_conv2 = jnp.zeros((Hp, Hp), f32).at[:H, :H].set(params["w_conv2"])
    w_l1 = jnp.concatenate([w_conv[0], w_conv2], axis=1)     # [Hp, 2*Hp] fused
    w_conv_rest = w_conv[1:]                                 # [NL-1, Hp, Hp]
    b_conv = _pad_last(params["b_conv"], Hp)
    gamma = _pad_last(params["gamma"], Hp)
    beta = _pad_last(params["beta"], Hp)
    b_conv2 = _pad_last(params["b_conv2"], Hp)
    gamma2 = _pad_last(params["gamma2"], Hp)
    beta2 = _pad_last(params["beta2"], Hp)
    w_lin = params["w_lin"].reshape(NL + 1, H, out_dim)
    w_lin = jnp.zeros((NL + 1, Hp, OUTp), f32).at[:, :H, :out_dim].set(w_lin)
    w_lin = w_lin.reshape((NL + 1) * Hp, OUTp)
    b_lin = _pad_last(params["b_lin"], OUTp)

    x_p = _pad_last(x, INp)
    invn = jnp.full((1, N), 1.0 / N, f32)     # BN batch-stat row (MXU reduce)

    # bf16 MXU operands, f32 elementwise/accumulation operands
    args = (
        x_p.astype(bf16), a_edge.astype(bf16), a_cyc.astype(bf16),
        pool_mat.astype(bf16), invn,
        w_emb.astype(bf16), b_emb,
        w_l1.astype(bf16), w_conv_rest.astype(bf16), b_conv, gamma, beta,
        b_conv2, gamma2, beta2,
        w_lin.astype(bf16), b_lin,
    )

    flops = (
        2 * N * INp * Hp                       # embedding
        + 2 * N * Hp * (2 * Hp)                # fused layer-1 weights
        + 2 * N * Hp * Hp * (NL - 1)           # remaining weight matmuls
        + 2 * N * N * Hp * (NL + 1)            # A @ XW (edge x3, cycle x1)
        + 2 * G * N * Hp * (NL + 1)            # mean pooling
        + 2 * 2 * N * Hp * (NL + 1)            # BN stats via MXU
        + 2 * G * (NL + 1) * Hp * OUTp         # final linear
    )
    bytes_accessed = (sum(int(np.prod(a.shape)) * a.dtype.itemsize
                          for a in args) + G * OUTp * 4)
    cost = pl.CostEstimate(flops=int(flops),
                           transcendentals=int((NL + 1) * Hp),
                           bytes_accessed=int(bytes_accessed))

    out = pl.pallas_call(
        cy2c_kernel,
        out_shape=jax.ShapeDtypeStruct((G, OUTp), f32),
        in_specs=[pl.BlockSpec(memory_space=pltpu.MemorySpace.VMEM)
                  for _ in args],
        out_specs=pl.BlockSpec(memory_space=pltpu.MemorySpace.VMEM),
        compiler_params=pltpu.CompilerParams(
            vmem_limit_bytes=64 * 1024 * 1024),
        cost_estimate=cost,
    )(*args)
    return out[:, :out_dim]


# ----------------------------------------------------------------------------
# Plain-JAX glue: graph preprocessing (scatter — no clean Pallas equivalent)
# ----------------------------------------------------------------------------
# TODO(synk): sparse edge_index/edge_attr -> dense normalized adjacency uses a
# scatter-add; kept in plain JAX.
def dense_gcn_adj(edge_index, edge_weight, n):
    """Dense symmetric-normalized GCN adjacency: D^-1/2 (A + I) D^-1/2."""
    row, col = edge_index[0], edge_index[1]
    a = jnp.zeros((n, n), jnp.float32).at[col, row].add(edge_weight)
    a = a + jnp.eye(n, dtype=jnp.float32)            # add_self_loops (weight 1)
    deg = a.sum(axis=1)
    dinv = jnp.where(deg > 0, 1.0 / jnp.sqrt(deg), 0.0)
    return a * dinv[:, None] * dinv[None, :]


def mean_pool_matrix(batch, num_graphs):
    onehot = (batch[None, :] == jnp.arange(num_graphs)[:, None]).astype(jnp.float32)
    counts = onehot.sum(axis=1, keepdims=True)
    return onehot / jnp.maximum(counts, 1.0)


# ----------------------------------------------------------------------------
# Pure-JAX f32 reference (same math) for a correctness check
# ----------------------------------------------------------------------------
def reference(x, a_edge, a_cyc, pool_mat, p):
    def bn_relu(h, g_, b_):
        mu = h.mean(0, keepdims=True)
        var = ((h - mu) ** 2).mean(0, keepdims=True)
        return jnp.maximum((h - mu) * jax.lax.rsqrt(var + BN_EPS) * g_ + b_, 0.0)

    x0 = x @ p["w_emb"] + p["b_emb"]
    pooled = []
    xx = x0
    for i in range(N_LAYER):
        h = a_edge @ (xx @ p["w_conv"][i]) + p["b_conv"][i][None, :]
        xx = bn_relu(h, p["gamma"][i][None, :], p["beta"][i][None, :]) + xx
        pooled.append(pool_mat @ xx)
    xx = x0
    h = a_cyc @ (xx @ p["w_conv2"]) + p["b_conv2"]
    xx = bn_relu(h, p["gamma2"], p["beta2"]) + xx
    pooled.append(pool_mat @ xx)
    return jnp.concatenate(pooled, axis=1) @ p["w_lin"] + p["b_lin"]


# ----------------------------------------------------------------------------
if __name__ == "__main__":
    # small shapes: 2 graphs x 8 nodes, in_dim=8, hidden=32, out_dim=4
    N, G, IN_DIM, H, OUT_DIM = 16, 2, 8, 32, 4

    key = jax.random.PRNGKey(0)
    ks = jax.random.split(key, 12)

    # deterministic synthetic parameters (shapes from the module __init__)
    params = {
        "w_emb":   0.1 * jax.random.normal(ks[0], (IN_DIM, H), jnp.float32),
        "b_emb":   0.1 * jax.random.normal(ks[1], (1, H), jnp.float32),
        "w_conv":  0.1 * jax.random.normal(ks[2], (N_LAYER, H, H), jnp.float32),
        "b_conv":  0.1 * jax.random.normal(ks[3], (N_LAYER, H), jnp.float32),
        "gamma":   1.0 + 0.1 * jax.random.normal(ks[4], (N_LAYER, H), jnp.float32),
        "beta":    0.1 * jax.random.normal(ks[5], (N_LAYER, H), jnp.float32),
        "w_conv2": 0.1 * jax.random.normal(ks[6], (H, H), jnp.float32),
        "b_conv2": 0.1 * jax.random.normal(ks[7], (1, H), jnp.float32),
        "gamma2":  1.0 + 0.1 * jax.random.normal(ks[8], (1, H), jnp.float32),
        "beta2":   0.1 * jax.random.normal(ks[9], (1, H), jnp.float32),
        "w_lin":   0.1 * jax.random.normal(ks[10], (H * (N_LAYER + 1), OUT_DIM),
                                           jnp.float32),
        "b_lin":   0.1 * jax.random.normal(ks[11], (1, OUT_DIM), jnp.float32),
    }

    # deterministic synthetic graph: two 8-node rings; cycle graph = 4-node ring
    edges, cyc = [], []
    for g in range(G):
        base = g * 8
        for i in range(8):
            a, b = base + i, base + (i + 1) % 8
            edges += [(a, b), (b, a)]
        for i in range(4):
            a, b = base + i, base + (i + 1) % 4
            cyc += [(a, b), (b, a)]
    edge_index = jnp.array(np.array(edges).T, dtype=jnp.int32)     # [2, 32]
    cycle_index = jnp.array(np.array(cyc).T, dtype=jnp.int32)      # [2, 16]
    batch = jnp.array([0] * 8 + [1] * 8, dtype=jnp.int32)          # [16]

    kx, ke = jax.random.split(jax.random.PRNGKey(1))
    x = jax.random.normal(kx, (N, IN_DIM), jnp.float32)
    edge_attr = jax.random.uniform(ke, (edge_index.shape[1],), jnp.float32,
                                   minval=0.5, maxval=1.5)         # edge weights

    # glue: dense normalized adjacencies + mean-pool matrix
    a_edge = dense_gcn_adj(edge_index, edge_attr, N)
    a_cyc = dense_gcn_adj(cycle_index,
                          jnp.ones((cycle_index.shape[1],), jnp.float32), N)
    pool_mat = mean_pool_matrix(batch, G)

    out = cy2c_forward(x, a_edge, a_cyc, pool_mat, params)
    out = jax.block_until_ready(out)

    ref = jax.block_until_ready(reference(x, a_edge, a_cyc, pool_mat, params))
    # bf16 MXU operands with f32 accumulation vs f32 reference -> looser tol
    np.testing.assert_allclose(np.asarray(out), np.asarray(ref),
                               rtol=5e-2, atol=3e-2)

    print("KERNEL_OK")
</pallas_src>

<mosaic_0001>
module attributes {stable_mosaic.version = 11 : i64} {
  func.func @cy2c_kernel(%arg0: memref<16x128xbf16, #tpu.memory_space<vmem>>, %arg1: memref<16x16xbf16, #tpu.memory_space<vmem>>, %arg2: memref<16x16xbf16, #tpu.memory_space<vmem>>, %arg3: memref<2x16xbf16, #tpu.memory_space<vmem>>, %arg4: memref<1x16xf32, #tpu.memory_space<vmem>>, %arg5: memref<128x128xbf16, #tpu.memory_space<vmem>>, %arg6: memref<1x128xf32, #tpu.memory_space<vmem>>, %arg7: memref<128x256xbf16, #tpu.memory_space<vmem>>, %arg8: memref<2x128x128xbf16, #tpu.memory_space<vmem>>, %arg9: memref<3x128xf32, #tpu.memory_space<vmem>>, %arg10: memref<3x128xf32, #tpu.memory_space<vmem>>, %arg11: memref<3x128xf32, #tpu.memory_space<vmem>>, %arg12: memref<1x128xf32, #tpu.memory_space<vmem>>, %arg13: memref<1x128xf32, #tpu.memory_space<vmem>>, %arg14: memref<1x128xf32, #tpu.memory_space<vmem>>, %arg15: memref<512x128xbf16, #tpu.memory_space<vmem>>, %arg16: memref<1x128xf32, #tpu.memory_space<vmem>>, %arg17: memref<2x128xf32, #tpu.memory_space<vmem>>) attributes {dimension_semantics = [], scalar_prefetch = 0 : i64, scratch_operands = 0 : i64, tpu.core_type = #tpu.core_type<tc>} {
    %c0 = arith.constant 0 : index
    %c0_0 = arith.constant 0 : index
    %0 = vector.load %arg1[%c0, %c0_0] : memref<16x16xbf16, #tpu.memory_space<vmem>>, vector<16x16xbf16>
    %c0_1 = arith.constant 0 : index
    %c0_2 = arith.constant 0 : index
    %1 = vector.load %arg2[%c0_1, %c0_2] : memref<16x16xbf16, #tpu.memory_space<vmem>>, vector<16x16xbf16>
    %c0_3 = arith.constant 0 : index
    %c0_4 = arith.constant 0 : index
    %2 = vector.load %arg3[%c0_3, %c0_4] : memref<2x16xbf16, #tpu.memory_space<vmem>>, vector<2x16xbf16>
    %c0_5 = arith.constant 0 : index
    %c0_6 = arith.constant 0 : index
    %3 = vector.load %arg4[%c0_5, %c0_6] : memref<1x16xf32, #tpu.memory_space<vmem>>, vector<1x16xf32>
    %c0_7 = arith.constant 0 : index
    %c0_8 = arith.constant 0 : index
    %4 = vector.load %arg0[%c0_7, %c0_8] : memref<16x128xbf16, #tpu.memory_space<vmem>>, vector<16x128xbf16>
    %c0_9 = arith.constant 0 : index
    %c0_10 = arith.constant 0 : index
    %5 = vector.load %arg5[%c0_9, %c0_10] : memref<128x128xbf16, #tpu.memory_space<vmem>>, vector<128x128xbf16>
    %cst = arith.constant dense<0.000000e+00> : vector<16x128xf32>
    %6 = tpu.matmul %4, %5, %cst {dimension_numbers = #tpu.dot_dimension_numbers<[1], [0], [0], [1], [0, 0, 1, 1], [], []>} : vector<16x128xbf16>, vector<128x128xbf16>, vector<16x128xf32> -> vector<16x128xf32>
    %c0_11 = arith.constant 0 : index
    %c0_12 = arith.constant 0 : index
    %7 = vector.load %arg6[%c0_11, %c0_12] : memref<1x128xf32, #tpu.memory_space<vmem>>, vector<1x128xf32>
    %8 = vector.broadcast %7 : vector<1x128xf32> to vector<16x128xf32>
    %9 = arith.addf %6, %8 : vector<16x128xf32>
    %10 = arith.truncf %9 : vector<16x128xf32> to vector<16x128xbf16>
    %c0_13 = arith.constant 0 : index
    %c0_14 = arith.constant 0 : index
    %11 = vector.load %arg7[%c0_13, %c0_14] : memref<128x256xbf16, #tpu.memory_space<vmem>>, vector<128x256xbf16>
    %cst_15 = arith.constant dense<0.000000e+00> : vector<16x256xf32>
    %12 = tpu.matmul %10, %11, %cst_15 {dimension_numbers = #tpu.dot_dimension_numbers<[1], [0], [0], [1], [0, 0, 1, 1], [], []>} : vector<16x128xbf16>, vector<128x256xbf16>, vector<16x256xf32> -> vector<16x256xf32>
    %13 = vector.extract_strided_slice %12 {offsets = [0, 0], sizes = [16, 128], strides = [1, 1]} : vector<16x256xf32> to vector<16x128xf32>
    %14 = vector.extract_strided_slice %12 {offsets = [0, 128], sizes = [16, 128], strides = [1, 1]} : vector<16x256xf32> to vector<16x128xf32>
    %15 = arith.truncf %13 : vector<16x128xf32> to vector<16x128xbf16>
    %cst_16 = arith.constant dense<0.000000e+00> : vector<16x128xf32>
    %16 = tpu.matmul %0, %15, %cst_16 {dimension_numbers = #tpu.dot_dimension_numbers<[1], [0], [0], [1], [0, 0, 1, 1], [], []>} : vector<16x16xbf16>, vector<16x128xbf16>, vector<16x128xf32> -> vector<16x128xf32>
    %c0_17 = arith.constant 0 : index
    %c0_18 = arith.constant 0 : index
    %17 = vector.load %arg9[%c0_17, %c0_18] : memref<3x128xf32, #tpu.memory_space<vmem>>, vector<1x128xf32>
    %18 = vector.broadcast %17 : vector<1x128xf32> to vector<16x128xf32>
    %19 = arith.addf %16, %18 : vector<16x128xf32>
    %c0_19 = arith.constant 0 : index
    %c0_20 = arith.constant 0 : index
    %20 = vector.load %arg10[%c0_19, %c0_20] : memref<3x128xf32, #tpu.memory_space<vmem>>, vector<1x128xf32>
    %c0_21 = arith.constant 0 : index
    %c0_22 = arith.constant 0 : index
    %21 = vector.load %arg11[%c0_21, %c0_22] : memref<3x128xf32, #tpu.memory_space<vmem>>, vector<1x128xf32>
    %cst_23 = arith.constant dense<0.000000e+00> : vector<1x128xf32>
    %22 = tpu.matmul %3, %19, %cst_23 {dimension_numbers = #tpu.dot_dimension_numbers<[1], [0], [0], [1], [0, 0, 1, 1], [], []>} : vector<1x16xf32>, vector<16x128xf32>, vector<1x128xf32> -> vector<1x128xf32>
    %23 = arith.mulf %19, %19 : vector<16x128xf32>
    %cst_24 = arith.constant dense<0.000000e+00> : vector<1x128xf32>
    %24 = tpu.matmul %3, %23, %cst_24 {dimension_numbers = #tpu.dot_dimension_numbers<[1], [0], [0], [1], [0, 0, 1, 1], [], []>} : vector<1x16xf32>, vector<16x128xf32>, vector<1x128xf32> -> vector<1x128xf32>
    %25 = arith.mulf %22, %22 : vector<1x128xf32>
    %26 = arith.subf %24, %25 : vector<1x128xf32>
    %27 = vector.broadcast %22 : vector<1x128xf32> to vector<16x128xf32>
    %28 = arith.subf %19, %27 : vector<16x128xf32>
    %cst_25 = arith.constant 9.99999974E-6 : f32
    %29 = vector.broadcast %cst_25 : f32 to vector<1x128xf32>
    %30 = arith.addf %26, %29 : vector<1x128xf32>
    %31 = math.rsqrt %30 : vector<1x128xf32>
    %32 = vector.broadcast %31 : vector<1x128xf32> to vector<16x128xf32>
    %33 = arith.mulf %28, %32 : vector<16x128xf32>
    %34 = vector.broadcast %20 : vector<1x128xf32> to vector<16x128xf32>
    %35 = arith.mulf %33, %34 : vector<16x128xf32>
    %36 = vector.broadcast %21 : vector<1x128xf32> to vector<16x128xf32>
    %37 = arith.addf %35, %36 : vector<16x128xf32>
    %cst_26 = arith.constant 0.000000e+00 : f32
    %38 = vector.broadcast %cst_26 : f32 to vector<16x128xf32>
    %39 = arith.maximumf %37, %38 : vector<16x128xf32>
    %40 = arith.addf %39, %9 : vector<16x128xf32>
    %41 = arith.truncf %40 : vector<16x128xf32> to vector<16x128xbf16>
    %cst_27 = arith.constant dense<0.000000e+00> : vector<2x128xf32>
    %42 = tpu.matmul %2, %41, %cst_27 {dimension_numbers = #tpu.dot_dimension_numbers<[1], [0], [0], [1], [0, 0, 1, 1], [], []>} : vector<2x16xbf16>, vector<16x128xbf16>, vector<2x128xf32> -> vector<2x128xf32>
    %43 = arith.truncf %40 : vector<16x128xf32> to vector<16x128xbf16>
    %c0_28 = arith.constant 0 : index
    %c0_29 = arith.constant 0 : index
    %c0_30 = arith.constant 0 : index
    %44 = vector.load %arg8[%c0_28, %c0_29, %c0_30] : memref<2x128x128xbf16, #tpu.memory_space<vmem>>, vector<1x128x128xbf16>
    %45 = vector.shape_cast %44 : vector<1x128x128xbf16> to vector<128x128xbf16>
    %cst_31 = arith.constant dense<0.000000e+00> : vector<16x128xf32>
    %46 = tpu.matmul %43, %45, %cst_31 {dimension_numbers = #tpu.dot_dimension_numbers<[1], [0], [0], [1], [0, 0, 1, 1], [], []>} : vector<16x128xbf16>, vector<128x128xbf16>, vector<16x128xf32> -> vector<16x128xf32>
    %47 = arith.truncf %46 : vector<16x128xf32> to vector<16x128xbf16>
    %cst_32 = arith.constant dense<0.000000e+00> : vector<16x128xf32>
    %48 = tpu.matmul %0, %47, %cst_32 {dimension_numbers = #tpu.dot_dimension_numbers<[1], [0], [0], [1], [0, 0, 1, 1], [], []>} : vector<16x16xbf16>, vector<16x128xbf16>, vector<16x128xf32> -> vector<16x128xf32>
    %c1 = arith.constant 1 : index
    %c0_33 = arith.constant 0 : index
    %49 = vector.load %arg9[%c1, %c0_33] : memref<3x128xf32, #tpu.memory_space<vmem>>, vector<1x128xf32>
    %50 = vector.broadcast %49 : vector<1x128xf32> to vector<16x128xf32>
    %51 = arith.addf %48, %50 : vector<16x128xf32>
    %c1_34 = arith.constant 1 : index
    %c0_35 = arith.constant 0 : index
    %52 = vector.load %arg10[%c1_34, %c0_35] : memref<3x128xf32, #tpu.memory_space<vmem>>, vector<1x128xf32>
    %c1_36 = arith.constant 1 : index
    %c0_37 = arith.constant 0 : index
    %53 = vector.load %arg11[%c1_36, %c0_37] : memref<3x128xf32, #tpu.memory_space<vmem>>, vector<1x128xf32>
    %cst_38 = arith.constant dense<0.000000e+00> : vector<1x128xf32>
    %54 = tpu.matmul %3, %51, %cst_38 {dimension_numbers = #tpu.dot_dimension_numbers<[1], [0], [0], [1], [0, 0, 1, 1], [], []>} : vector<1x16xf32>, vector<16x128xf32>, vector<1x128xf32> -> vector<1x128xf32>
    %55 = arith.mulf %51, %51 : vector<16x128xf32>
    %cst_39 = arith.constant dense<0.000000e+00> : vector<1x128xf32>
    %56 = tpu.matmul %3, %55, %cst_39 {dimension_numbers = #tpu.dot_dimension_numbers<[1], [0], [0], [1], [0, 0, 1, 1], [], []>} : vector<1x16xf32>, vector<16x128xf32>, vector<1x128xf32> -> vector<1x128xf32>
    %57 = arith.mulf %54, %54 : vector<1x128xf32>
    %58 = arith.subf %56, %57 : vector<1x128xf32>
    %59 = vector.broadcast %54 : vector<1x128xf32> to vector<16x128xf32>
    %60 = arith.subf %51, %59 : vector<16x128xf32>
    %cst_40 = arith.constant 9.99999974E-6 : f32
    %61 = vector.broadcast %cst_40 : f32 to vector<1x128xf32>
    %62 = arith.addf %58, %61 : vector<1x128xf32>
    %63 = math.rsqrt %62 : vector<1x128xf32>
    %64 = vector.broadcast %63 : vector<1x128xf32> to vector<16x128xf32>
    %65 = arith.mulf %60, %64 : vector<16x128xf32>
    %66 = vector.broadcast %52 : vector<1x128xf32> to vector<16x128xf32>
    %67 = arith.mulf %65, %66 : vector<16x128xf32>
    %68 = vector.broadcast %53 : vector<1x128xf32> to vector<16x128xf32>
    %69 = arith.addf %67, %68 : vector<16x128xf32>
    %cst_41 = arith.constant 0.000000e+00 : f32
    %70 = vector.broadcast %cst_41 : f32 to vector<16x128xf32>
    %71 = arith.maximumf %69, %70 : vector<16x128xf32>
    %72 = arith.addf %71, %40 : vector<16x128xf32>
    %73 = arith.truncf %72 : vector<16x128xf32> to vector<16x128xbf16>
    %cst_42 = arith.constant dense<0.000000e+00> : vector<2x128xf32>
    %74 = tpu.matmul %2, %73, %cst_42 {dimension_numbers = #tpu.dot_dimension_numbers<[1], [0], [0], [1], [0, 0, 1, 1], [], []>} : vector<2x16xbf16>, vector<16x128xbf16>, vector<2x128xf32> -> vector<2x128xf32>
    %75 = arith.truncf %72 : vector<16x128xf32> to vector<16x128xbf16>
    %c1_43 = arith.constant 1 : index
    %c0_44 = arith.constant 0 : index
    %c0_45 = arith.constant 0 : index
    %76 = vector.load %arg8[%c1_43, %c0_44, %c0_45] : memref<2x128x128xbf16, #tpu.memory_space<vmem>>, vector<1x128x128xbf16>
    %77 = vector.shape_cast %76 : vector<1x128x128xbf16> to vector<128x128xbf16>
    %cst_46 = arith.constant dense<0.000000e+00> : vector<16x128xf32>
    %78 = tpu.matmul %75, %77, %cst_46 {dimension_numbers = #tpu.dot_dimension_numbers<[1], [0], [0], [1], [0, 0, 1, 1], [], []>} : vector<16x128xbf16>, vector<128x128xbf16>, vector<16x128xf32> -> vector<16x128xf32>
    %79 = arith.truncf %78 : vector<16x128xf32> to vector<16x128xbf16>
    %cst_47 = arith.constant dense<0.000000e+00> : vector<16x128xf32>
    %80 = tpu.matmul %0, %79, %cst_47 {dimension_numbers = #tpu.dot_dimension_numbers<[1], [0], [0], [1], [0, 0, 1, 1], [], []>} : vector<16x16xbf16>, vector<16x128xbf16>, vector<16x128xf32> -> vector<16x128xf32>
    %c2 = arith.constant 2 : index
    %c0_48 = arith.constant 0 : index
    %81 = vector.load %arg9[%c2, %c0_48] : memref<3x128xf32, #tpu.memory_space<vmem>>, vector<1x128xf32>
    %82 = vector.broadcast %81 : vector<1x128xf32> to vector<16x128xf32>
    %83 = arith.addf %80, %82 : vector<16x128xf32>
    %c2_49 = arith.constant 2 : index
    %c0_50 = arith.constant 0 : index
    %84 = vector.load %arg10[%c2_49, %c0_50] : memref<3x128xf32, #tpu.memory_space<vmem>>, vector<1x128xf32>
    %c2_51 = arith.constant 2 : index
    %c0_52 = arith.constant 0 : index
    %85 = vector.load %arg11[%c2_51, %c0_52] : memref<3x128xf32, #tpu.memory_space<vmem>>, vector<1x128xf32>
    %cst_53 = arith.constant dense<0.000000e+00> : vector<1x128xf32>
    %86 = tpu.matmul %3, %83, %cst_53 {dimension_numbers = #tpu.dot_dimension_numbers<[1], [0], [0], [1], [0, 0, 1, 1], [], []>} : vector<1x16xf32>, vector<16x128xf32>, vector<1x128xf32> -> vector<1x128xf32>
    %87 = arith.mulf %83, %83 : vector<16x128xf32>
    %cst_54 = arith.constant dense<0.000000e+00> : vector<1x128xf32>
    %88 = tpu.matmul %3, %87, %cst_54 {dimension_numbers = #tpu.dot_dimension_numbers<[1], [0], [0], [1], [0, 0, 1, 1], [], []>} : vector<1x16xf32>, vector<16x128xf32>, vector<1x128xf32> -> vector<1x128xf32>
    %89 = arith.mulf %86, %86 : vector<1x128xf32>
    %90 = arith.subf %88, %89 : vector<1x128xf32>
    %91 = vector.broadcast %86 : vector<1x128xf32> to vector<16x128xf32>
    %92 = arith.subf %83, %91 : vector<16x128xf32>
    %cst_55 = arith.constant 9.99999974E-6 : f32
    %93 = vector.broadcast %cst_55 : f32 to vector<1x128xf32>
    %94 = arith.addf %90, %93 : vector<1x128xf32>
    %95 = math.rsqrt %94 : vector<1x128xf32>
    %96 = vector.broadcast %95 : vector<1x128xf32> to vector<16x128xf32>
    %97 = arith.mulf %92, %96 : vector<16x128xf32>
    %98 = vector.broadcast %84 : vector<1x128xf32> to vector<16x128xf32>
    %99 = arith.mulf %97, %98 : vector<16x128xf32>
    %100 = vector.broadcast %85 : vector<1x128xf32> to vector<16x128xf32>
    %101 = arith.addf %99, %100 : vector<16x128xf32>
    %cst_56 = arith.constant 0.000000e+00 : f32
    %102 = vector.broadcast %cst_56 : f32 to vector<16x128xf32>
    %103 = arith.maximumf %101, %102 : vector<16x128xf32>
    %104 = arith.addf %103, %72 : vector<16x128xf32>
    %105 = arith.truncf %104 : vector<16x128xf32> to vector<16x128xbf16>
    %cst_57 = arith.constant dense<0.000000e+00> : vector<2x128xf32>
    %106 = tpu.matmul %2, %105, %cst_57 {dimension_numbers = #tpu.dot_dimension_numbers<[1], [0], [0], [1], [0, 0, 1, 1], [], []>} : vector<2x16xbf16>, vector<16x128xbf16>, vector<2x128xf32> -> vector<2x128xf32>
    %107 = arith.truncf %14 : vector<16x128xf32> to vector<16x128xbf16>
    %cst_58 = arith.constant dense<0.000000e+00> : vector<16x128xf32>
    %108 = tpu.matmul %1, %107, %cst_58 {dimension_numbers = #tpu.dot_dimension_numbers<[1], [0], [0], [1], [0, 0, 1, 1], [], []>} : vector<16x16xbf16>, vector<16x128xbf16>, vector<16x128xf32> -> vector<16x128xf32>
    %c0_59 = arith.constant 0 : index
    %c0_60 = arith.constant 0 : index
    %109 = vector.load %arg12[%c0_59, %c0_60] : memref<1x128xf32, #tpu.memory_space<vmem>>, vector<1x128xf32>
    %110 = vector.broadcast %109 : vector<1x128xf32> to vector<16x128xf32>
    %111 = arith.addf %108, %110 : vector<16x128xf32>
    %c0_61 = arith.constant 0 : index
    %c0_62 = arith.constant 0 : index
    %112 = vector.load %arg13[%c0_61, %c0_62] : memref<1x128xf32, #tpu.memory_space<vmem>>, vector<1x128xf32>
    %c0_63 = arith.constant 0 : index
    %c0_64 = arith.constant 0 : index
    %113 = vector.load %arg14[%c0_63, %c0_64] : memref<1x128xf32, #tpu.memory_space<vmem>>, vector<1x128xf32>
    %cst_65 = arith.constant dense<0.000000e+00> : vector<1x128xf32>
    %114 = tpu.matmul %3, %111, %cst_65 {dimension_numbers = #tpu.dot_dimension_numbers<[1], [0], [0], [1], [0, 0, 1, 1], [], []>} : vector<1x16xf32>, vector<16x128xf32>, vector<1x128xf32> -> vector<1x128xf32>
    %115 = arith.mulf %111, %111 : vector<16x128xf32>
    %cst_66 = arith.constant dense<0.000000e+00> : vector<1x128xf32>
    %116 = tpu.matmul %3, %115, %cst_66 {dimension_numbers = #tpu.dot_dimension_numbers<[1], [0], [0], [1], [0, 0, 1, 1], [], []>} : vector<1x16xf32>, vector<16x128xf32>, vector<1x128xf32> -> vector<1x128xf32>
    %117 = arith.mulf %114, %114 : vector<1x128xf32>
    %118 = arith.subf %116, %117 : vector<1x128xf32>
    %119 = vector.broadcast %114 : vector<1x128xf32> to vector<16x128xf32>
    %120 = arith.subf %111, %119 : vector<16x128xf32>
    %cst_67 = arith.constant 9.99999974E-6 : f32
    %121 = vector.broadcast %cst_67 : f32 to vector<1x128xf32>
    %122 = arith.addf %118, %121 : vector<1x128xf32>
    %123 = math.rsqrt %122 : vector<1x128xf32>
    %124 = vector.broadcast %123 : vector<1x128xf32> to vector<16x128xf32>
    %125 = arith.mulf %120, %124 : vector<16x128xf32>
    %126 = vector.broadcast %112 : vector<1x128xf32> to vector<16x128xf32>
    %127 = arith.mulf %125, %126 : vector<16x128xf32>
    %128 = vector.broadcast %113 : vector<1x128xf32> to vector<16x128xf32>
    %129 = arith.addf %127, %128 : vector<16x128xf32>
    %cst_68 = arith.constant 0.000000e+00 : f32
    %130 = vector.broadcast %cst_68 : f32 to vector<16x128xf32>
    %131 = arith.maximumf %129, %130 : vector<16x128xf32>
    %132 = arith.addf %131, %9 : vector<16x128xf32>
    %133 = arith.truncf %132 : vector<16x128xf32> to vector<16x128xbf16>
    %cst_69 = arith.constant dense<0.000000e+00> : vector<2x128xf32>
    %134 = tpu.matmul %2, %133, %cst_69 {dimension_numbers = #tpu.dot_dimension_numbers<[1], [0], [0], [1], [0, 0, 1, 1], [], []>} : vector<2x16xbf16>, vector<16x128xbf16>, vector<2x128xf32> -> vector<2x128xf32>
    %135 = tpu.concatenate %42, %74, %106, %134 in 1 : vector<2x128xf32>, vector<2x128xf32>, vector<2x128xf32>, vector<2x128xf32> -> vector<2x512xf32>
    %136 = arith.truncf %135 : vector<2x512xf32> to vector<2x512xbf16>
    %c0_70 = arith.constant 0 : index
    %c0_71 = arith.constant 0 : index
    %137 = vector.load %arg15[%c0_70, %c0_71] : memref<512x128xbf16, #tpu.memory_space<vmem>>, vector<512x128xbf16>
    %cst_72 = arith.constant dense<0.000000e+00> : vector<2x128xf32>
    %138 = tpu.matmul %136, %137, %cst_72 {dimension_numbers = #tpu.dot_dimension_numbers<[1], [0], [0], [1], [0, 0, 1, 1], [], []>} : vector<2x512xbf16>, vector<512x128xbf16>, vector<2x128xf32> -> vector<2x128xf32>
    %c0_73 = arith.constant 0 : index
    %c0_74 = arith.constant 0 : index
    %139 = vector.load %arg16[%c0_73, %c0_74] : memref<1x128xf32, #tpu.memory_space<vmem>>, vector<1x128xf32>
    %140 = vector.broadcast %139 : vector<1x128xf32> to vector<2x128xf32>
    %141 = arith.addf %138, %140 : vector<2x128xf32>
    %c0_75 = arith.constant 0 : index
    %c0_76 = arith.constant 0 : index
    %142 = vector.load %arg17[%c0_75, %c0_76] : memref<2x128xf32, #tpu.memory_space<vmem>>, vector<2x128xf32>
    tpu.vector_store %arg17[%c0_75, %c0_76], %141 {strides = array<i32>} : memref<2x128xf32, #tpu.memory_space<vmem>>, vector<2x128xf32>,
    return
  }
}

</mosaic_0001>

<bundles_post_ra>
// kernel: tpu_custom_call.1
= control target key start
LH: loop header
LB: loop body
LE: loop exit
PB: predicated region body
PF: predicated region fallthrough
CT: control target
= control target key end

     0   :  { %s3701_s0 = inlined_call_operand.hbm [shape: bf16[16,128], index: 0, kind: input, shape index: {}]   ;;  %s3702_s1 = inlined_call_operand.hbm [shape: bf16[16,16], index: 1, kind: input, shape index: {}]   ;;  %s3703_s2 = inlined_call_operand.hbm [shape: bf16[16,16], index: 2, kind: input, shape index: {}]   ;;  %s3704_s3 = inlined_call_operand.hbm [shape: bf16[2,16], index: 3, kind: input, shape index: {}]   ;;  %s3705_s4 = inlined_call_operand.hbm [shape: f32[1,16], index: 4, kind: input, shape index: {}]   ;;  %s3706_s5 = inlined_call_operand.hbm [shape: bf16[128,128], index: 5, kind: input, shape index: {}]   ;;  %s3707_s6 = inlined_call_operand.hbm [shape: f32[1,128], index: 6, kind: input, shape index: {}]   ;;  %s3708_s7 = inlined_call_operand.hbm [shape: bf16[128,256], index: 7, kind: input, shape index: {}]   ;;  %s3709_s8 = inlined_call_operand.hbm [shape: bf16[2,128,128], index: 8, kind: input, shape index: {}]   ;;  %s3710_s9 = inlined_call_operand.hbm [shape: f32[3,128], index: 9, kind: input, shape index: {}]   ;;  %s3711_s10 = inlined_call_operand.hbm [shape: f32[3,128], index: 10, kind: input, shape index: {}]   ;;  %s3712_s11 = inlined_call_operand.hbm [shape: f32[3,128], index: 11, kind: input, shape index: {}]   ;;  %s3713_s12 = inlined_call_operand.hbm [shape: f32[1,128], index: 12, kind: input, shape index: {}]   ;;  %s3714_s13 = inlined_call_operand.hbm [shape: f32[1,128], index: 13, kind: input, shape index: {}]   ;;  %s3715_s14 = inlined_call_operand.hbm [shape: f32[1,128], index: 14, kind: input, shape index: {}]   ;;  %s3716_s15 = inlined_call_operand.hbm [shape: bf16[512,128], index: 15, kind: input, shape index: {}]   ;;  %s3717_s16 = inlined_call_operand.hbm [shape: f32[1,128], index: 16, kind: input, shape index: {}]   ;;  %s3718_s17 = inlined_call_operand.hbm [shape: f32[2,128], index: 17, kind: output, shape index: {}]  }
   0x1   :  { %3725 = sst [smem:[#allocation40_spill]] %s3701_s0 }
   0x2   :  { %3726 = sst [smem:[#allocation41_spill]] %s3702_s1 }
   0x3   :  { %22 = vsyncpa [#allocation3], 0 }
   0x4   :  { %23 = vsyncpa [#allocation6], 0 }
   0x5   :  { %24 = vsyncpa [#allocation9], 0 }
   0x6   :  { %25 = vsyncpa [#allocation12], 0 }
   0x7   :  { %26 = vsyncpa [#allocation15], 0 }
   0x8   :  { %27 = vsyncpa [#allocation18], 0 }
   0x9   :  { %28 = vsyncpa [#allocation21], 0 }
   0xa   :  { %29 = vsyncpa [#allocation24], 0 }
   0xb   :  { %30 = vsyncpa [#allocation27], 0 }
   0xc   :  { %31 = vsyncpa [#allocation4], 0  ;;  %s3138_s24 = smov [#allocation5]   ;;  %s3139_s26 = smov [#allocation8]  }
   0xd   :  { %s49_s25 = sshll.u32 %s3138_s24, 4  ;;  %s74_s27 = sshll.u32 %s3139_s26, 4  ;;  %s50_s25 = int_to_ptr.vmem [resolvable:$true] %s49_s25  ;;  %s3254_s27 = int_to_ptr.vmem [resolvable:$true] %s74_s27 }
   0xe   :  { %s3727_s0 = sld [smem:[#allocation41_spill]] }
  0x14   :  { %s2722_s30 = scalar_lea.hbm %s3727_s0, 128 }
  0x15   :  { %p2723_p0 = scmp.ne.s32.totalorder %s3727_s0, %s2722_s30  ;;  %p2726_p1 = scmp.lt.u32.totalorder %s2722_s30, %s3727_s0 }
  0x17   :  { %p2728_p2 = pnand %p2726_p1, %p2723_p0 }
  0x19   :  { %2731 = shalt.err (!%p2728_p2)
}
  0x1a   :  { %s2732_s21 = scalar_lea.vmem %s50_s25, 128  ;;  %p2737_p4 = scmp.lt.s32.totalorder %s50_s25, %s50_s25 }
  0x1b   :  { %p2733_p3 = scmp.ne.s32.totalorder %s50_s25, %s2732_s21  ;;  %p2738_p5 = scmp.lt.s32.totalorder %s2732_s21, %s2732_s21 }
  0x1d   :  { %p2739_p6 = por %p2738_p5, %p2737_p4 }
  0x1f   :  { %p2740_p7 = pnand %p2739_p6, %p2733_p3 }
  0x21   :  { %2743 = shalt.err (!%p2740_p7)
}
  0x22   :  { %s3721_s22 = smov 64   ;;  %s3723_s23 = smov 4  }
  0x23   :  { %55 = dma.hbm_to_vmem [thread:$0]  %s3727_s0, 128, %s50_s25, [#allocation6], %s3721_s22, %s3721_s22, %s3723_s23  }
  0x24   :  { %s2744_s30 = scalar_lea.hbm %s3704_s3, 16 }
  0x25   :  { %p2745_p8 = scmp.ne.s32.totalorder %s3704_s3, %s2744_s30  ;;  %p2748_p9 = scmp.lt.u32.totalorder %s2744_s30, %s3704_s3 }
  0x27   :  { %p2750_p10 = pnand %p2748_p9, %p2745_p8 }
  0x29   :  { %2753 = shalt.err (!%p2750_p10)
}
  0x2a   :  { %s2754_s21 = scalar_lea.vmem %s3254_s27, 16  ;;  %s2758_s25 = scalar_lea.vmem %s3254_s27, 32 }
  0x2b   :  { %p2755_p11 = scmp.ne.s32.totalorder %s3254_s27, %s2754_s21  ;;  %p2759_p12 = scmp.lt.s32.totalorder %s3254_s27, %s3254_s27 }
  0x2c   :  { %p2760_p13 = scmp.lt.s32.totalorder %s2758_s25, %s2754_s21 }
  0x2e   :  { %p2761_p0 = por %p2760_p13, %p2759_p12 }
  0x30   :  { %p2762_p1 = pnand %p2761_p0, %p2755_p11 }
  0x32   :  { %2765 = shalt.err (!%p2762_p1)
}
  0x33   :  { %77 = dma.hbm_to_vmem [thread:$0]  %s3704_s3, 16, %s3254_s27, [#allocation9]  }
  0x34   :  { %s3142_s26 = smov [#allocation11]   ;;  %s3143_s29 = smov [#allocation14]  }
  0x35   :  { %s93_s28 = sshll.u32 %s3142_s26, 4  ;;  %s115_s30 = sshll.u32 %s3143_s29, 4  ;;  %s94_s28 = int_to_ptr.vmem [resolvable:$true] %s93_s28  ;;  %s3289_s30 = int_to_ptr.vmem [resolvable:$true] %s115_s30 }
  0x36   :  { %s2766_s1 = scalar_lea.hbm %s3706_s5, 1024 }
  0x37   :  { %p2767_p2 = scmp.ne.s32.totalorder %s3706_s5, %s2766_s1  ;;  %p2770_p3 = scmp.lt.u32.totalorder %s2766_s1, %s3706_s5 }
  0x39   :  { %p2772_p4 = pnand %p2770_p3, %p2767_p2 }
  0x3b   :  { %2775 = shalt.err (!%p2772_p4)
}
  0x3c   :  { %s2776_s3 = scalar_lea.vmem %s94_s28, 1024  ;;  %p2781_p6 = scmp.lt.s32.totalorder %s94_s28, %s94_s28 }
  0x3d   :  { %p2777_p5 = scmp.ne.s32.totalorder %s94_s28, %s2776_s3  ;;  %p2782_p7 = scmp.lt.s32.totalorder %s2776_s3, %s2776_s3 }
  0x3f   :  { %p2783_p8 = por %p2782_p7, %p2781_p6 }
  0x41   :  { %p2784_p9 = pnand %p2783_p8, %p2777_p5 }
  0x43   :  { %2787 = shalt.err (!%p2784_p9)
}
  0x44   :  { %s3728_s27 = smov 64   ;;  %s2788_s22 = scalar_lea.hbm %s3708_s7, 2048 }
  0x45   :  { %99 = dma.hbm_to_vmem [thread:$0]  %s3706_s5, 1024, %s94_s28, [#allocation12], %s3728_s27, %s3728_s27, %s3723_s23  }
  0x46   :  { %p2789_p10 = scmp.ne.s32.totalorder %s3708_s7, %s2788_s22  ;;  %p2792_p11 = scmp.lt.u32.totalorder %s2788_s22, %s3708_s7 }
  0x48   :  { %p2794_p12 = pnand %p2792_p11, %p2789_p10 }
  0x4a   :  { %2797 = shalt.err (!%p2794_p12)
}
  0x4b   :  { %s2798_s21 = scalar_lea.vmem %s3289_s30, 2048  ;;  %p2803_p0 = scmp.lt.s32.totalorder %s3289_s30, %s3289_s30 }
  0x4c   :  { %p2799_p13 = scmp.ne.s32.totalorder %s3289_s30, %s2798_s21  ;;  %p2804_p1 = scmp.lt.s32.totalorder %s2798_s21, %s2798_s21 }
  0x4e   :  { %p2805_p2 = por %p2804_p1, %p2803_p0 }
  0x50   :  { %p2806_p3 = pnand %p2805_p2, %p2799_p13 }
  0x52   :  { %2809 = shalt.err (!%p2806_p3)
}
  0x53   :  { %s3144_s5 = smov 128   ;;  %s3145_s28 = smov 8  }
  0x54   :  { %121 = dma.hbm_to_vmem [thread:$0]  %s3708_s7, 2048, %s3289_s30, [#allocation15], %s3144_s5, %s3144_s5, %s3145_s28  }
  0x55   :  { %s3146_s0 = smov [#allocation17]   ;;  %s3147_s26 = smov [#allocation20]  }
  0x56   :  { %s140_s24 = sshll.u32 %s3146_s0, 4  ;;  %s160_s29 = sshll.u32 %s3147_s26, 4  ;;  %s141_s24 = int_to_ptr.vmem [resolvable:$true] %s140_s24  ;;  %s161_s29 = int_to_ptr.vmem [resolvable:$true] %s160_s29 }
  0x57   :  { %s2810_s19 = scalar_lea.hbm %s3710_s9, 64 }
  0x58   :  { %p2811_p4 = scmp.ne.s32.totalorder %s3710_s9, %s2810_s19  ;;  %p2814_p5 = scmp.lt.u32.totalorder %s2810_s19, %s3710_s9 }
  0x5a   :  { %p2816_p6 = pnand %p2814_p5, %p2811_p4 }
  0x5c   :  { %2819 = shalt.err (!%p2816_p6)
}
  0x5d   :  { %s2820_s7 = scalar_lea.vmem %s141_s24, 64  ;;  %p2825_p8 = scmp.lt.s32.totalorder %s141_s24, %s141_s24 }
  0x5e   :  { %p2821_p7 = scmp.ne.s32.totalorder %s141_s24, %s2820_s7  ;;  %p2826_p9 = scmp.lt.s32.totalorder %s2820_s7, %s2820_s7 }
  0x60   :  { %p2827_p10 = por %p2826_p9, %p2825_p8 }
  0x62   :  { %p2828_p11 = pnand %p2827_p10, %p2821_p7 }
  0x64   :  { %2831 = shalt.err (!%p2828_p11)
}
  0x65   :  { %143 = dma.hbm_to_vmem [thread:$0]  %s3710_s9, 64, %s141_s24, [#allocation18]  }
  0x66   :  { %s2832_s3 = scalar_lea.hbm %s3712_s11, 64 }
  0x67   :  { %p2833_p12 = scmp.ne.s32.totalorder %s3712_s11, %s2832_s3  ;;  %p2836_p13 = scmp.lt.u32.totalorder %s2832_s3, %s3712_s11 }
  0x69   :  { %p2838_p0 = pnand %p2836_p13, %p2833_p12 }
  0x6b   :  { %2841 = shalt.err (!%p2838_p0)
}
  0x6c   :  { %s2842_s18 = scalar_lea.vmem %s161_s29, 64  ;;  %p2847_p2 = scmp.lt.s32.totalorder %s161_s29, %s161_s29 }
  0x6d   :  { %p2843_p1 = scmp.ne.s32.totalorder %s161_s29, %s2842_s18  ;;  %p2848_p3 = scmp.lt.s32.totalorder %s2842_s18, %s2842_s18 }
  0x6f   :  { %p2849_p4 = por %p2848_p3, %p2847_p2 }
  0x71   :  { %p2850_p5 = pnand %p2849_p4, %p2843_p1 }
  0x73   :  { %2853 = shalt.err (!%p2850_p5)
}
  0x74   :  { %163 = dma.hbm_to_vmem [thread:$0]  %s3712_s11, 64, %s161_s29, [#allocation21]  }
  0x75   :  { %s3148_s19 = smov [#allocation23]   ;;  %s3149_s20 = smov [#allocation26]  }
  0x76   :  { %s180_s1 = sshll.u32 %s3148_s19, 4  ;;  %s199_s21 = sshll.u32 %s3149_s20, 4  ;;  %s181_s1 = int_to_ptr.vmem [resolvable:$true] %s180_s1  ;;  %s3347_s21 = int_to_ptr.vmem [resolvable:$true] %s199_s21 }
  0x77   :  { %s2854_s5 = scalar_lea.hbm %s3714_s13, 16 }
  0x78   :  { %p2855_p6 = scmp.ne.s32.totalorder %s3714_s13, %s2854_s5  ;;  %p2858_p7 = scmp.lt.u32.totalorder %s2854_s5, %s3714_s13 }
  0x7a   :  { %p2860_p8 = pnand %p2858_p7, %p2855_p6 }
  0x7c   :  { %2863 = shalt.err (!%p2860_p8)
}
  0x7d   :  { %s2864_s11 = scalar_lea.vmem %s181_s1, 16  ;;  %s2868_s29 = scalar_lea.vmem %s181_s1, 32 }
  0x7e   :  { %p2865_p9 = scmp.ne.s32.totalorder %s181_s1, %s2864_s11  ;;  %p2869_p10 = scmp.lt.s32.totalorder %s181_s1, %s181_s1 }
  0x7f   :  { %p2870_p11 = scmp.lt.s32.totalorder %s2868_s29, %s2864_s11 }
  0x81   :  { %p2871_p12 = por %p2870_p11, %p2869_p10 }
  0x83   :  { %p2872_p13 = pnand %p2871_p12, %p2865_p9 }
  0x85   :  { %2875 = shalt.err (!%p2872_p13)
}
  0x86   :  { %183 = dma.hbm_to_vmem [thread:$0]  %s3714_s13, 16, %s181_s1, [#allocation24]  }
  0x87   :  { %s2876_s9 = scalar_lea.hbm %s3716_s15, 4096 }
  0x88   :  { %p2877_p0 = scmp.ne.s32.totalorder %s3716_s15, %s2876_s9  ;;  %p2880_p1 = scmp.lt.u32.totalorder %s2876_s9, %s3716_s15 }
  0x8a   :  { %p2882_p2 = pnand %p2880_p1, %p2877_p0 }
  0x8c   :  { %2885 = shalt.err (!%p2882_p2)
}
  0x8d   :  { %s2886_s30 = scalar_lea.vmem %s3347_s21, 4096  ;;  %p2891_p4 = scmp.lt.s32.totalorder %s3347_s21, %s3347_s21 }
  0x8e   :  { %p2887_p3 = scmp.ne.s32.totalorder %s3347_s21, %s2886_s30  ;;  %p2892_p5 = scmp.lt.s32.totalorder %s2886_s30, %s2886_s30 }
  0x90   :  { %p2893_p6 = por %p2892_p5, %p2891_p4 }
  0x92   :  { %p2894_p7 = pnand %p2893_p6, %p2887_p3 }
  0x94   :  { %2897 = shalt.err (!%p2894_p7)
}
  0x95   :  { %s3729_s13 = smov 4   ;;  %s3150_s28 = smov [#allocation2]  }
  0x96   :  { %205 = dma.hbm_to_vmem [thread:$0]  %s3716_s15, 4096, %s3347_s21, [#allocation27], %s3728_s27, %s3728_s27, %s3729_s13  }
  0x97   :  { %s37_s25 = sshll.u32 %s3150_s28, 4  ;;  %s3151_s3 = smov [#allocation7]   ;;  %s38_s25 = int_to_ptr.vmem [resolvable:$true] %s37_s25 }
  0x98   :  { %s61_s0 = sshll.u32 %s3151_s3, 4  ;;  %s3730_s23 = sld [smem:[#allocation40_spill]]  ;;  %s3381_s0 = int_to_ptr.vmem [resolvable:$true] %s61_s0 }
  0x9e   :  { %s2898_s26 = scalar_lea.hbm %s3730_s23, 128 }
  0x9f   :  { %p2899_p8 = scmp.ne.s32.totalorder %s3730_s23, %s2898_s26  ;;  %p2902_p9 = scmp.lt.u32.totalorder %s2898_s26, %s3730_s23 }
  0xa1   :  { %p2904_p10 = pnand %p2902_p9, %p2899_p8 }
  0xa3   :  { %2907 = shalt.err (!%p2904_p10)
}
  0xa4   :  { %s2908_s15 = scalar_lea.vmem %s38_s25, 128  ;;  %p2913_p12 = scmp.lt.s32.totalorder %s38_s25, %s38_s25 }
  0xa5   :  { %p2909_p11 = scmp.ne.s32.totalorder %s38_s25, %s2908_s15  ;;  %p2914_p13 = scmp.lt.s32.totalorder %s2908_s15, %s2908_s15 }
  0xa7   :  { %p2915_p0 = por %p2914_p13, %p2913_p12 }
  0xa9   :  { %p2916_p1 = pnand %p2915_p0, %p2909_p11 }
  0xab   :  { %2919 = shalt.err (!%p2916_p1)
}
  0xac   :  { %43 = dma.hbm_to_vmem [thread:$0]  %s3730_s23, 128, %s38_s25, [#allocation3], %s3728_s27, %s3728_s27, %s3729_s13  }
  0xad   :  { %s2920_s30 = scalar_lea.hbm %s3703_s2, 128 }
  0xae   :  { %p2921_p2 = scmp.ne.s32.totalorder %s3703_s2, %s2920_s30  ;;  %p2924_p3 = scmp.lt.u32.totalorder %s2920_s30, %s3703_s2 }
  0xb0   :  { %p2926_p4 = pnand %p2924_p3, %p2921_p2 }
  0xb2   :  { %2929 = shalt.err (!%p2926_p4)
}
  0xb3   :  { %s2930_s11 = scalar_lea.vmem %s3381_s0, 128  ;;  %p2935_p6 = scmp.lt.s32.totalorder %s3381_s0, %s3381_s0 }
  0xb4   :  { %p2931_p5 = scmp.ne.s32.totalorder %s3381_s0, %s2930_s11  ;;  %p2936_p7 = scmp.lt.s32.totalorder %s2930_s11, %s2930_s11 }
  0xb6   :  { %p2937_p8 = por %p2936_p7, %p2935_p6 }
  0xb8   :  { %p2938_p9 = pnand %p2937_p8, %p2931_p5 }
  0xba   :  { %2941 = shalt.err (!%p2938_p9)
}
  0xbb   :  { %67 = dma.hbm_to_vmem [thread:$0]  %s3703_s2, 128, %s3381_s0, [#allocation6], %s3728_s27, %s3728_s27, %s3729_s13  }
  0xbc   :  { %s3152_s23 = smov [#allocation10]   ;;  %s3153_s22 = smov [#allocation13]  }
  0xbd   :  { %s84_s26 = sshll.u32 %s3152_s23, 4  ;;  %s106_s18 = sshll.u32 %s3153_s22, 4  ;;  %s85_s26 = int_to_ptr.vmem [resolvable:$true] %s84_s26  ;;  %s107_s18 = int_to_ptr.vmem [resolvable:$true] %s106_s18 }
  0xbe   :  { %s2942_s15 = scalar_lea.hbm %s3705_s4, 16 }
  0xbf   :  { %p2943_p10 = scmp.ne.s32.totalorder %s3705_s4, %s2942_s15  ;;  %p2946_p11 = scmp.lt.u32.totalorder %s2942_s15, %s3705_s4 }
  0xc1   :  { %p2948_p12 = pnand %p2946_p11, %p2943_p10 }
  0xc3   :  { %2951 = shalt.err (!%p2948_p12)
}
  0xc4   :  { %s2952_s2 = scalar_lea.vmem %s85_s26, 16  ;;  %s2956_s0 = scalar_lea.vmem %s85_s26, 32 }
  0xc5   :  { %p2953_p13 = scmp.ne.s32.totalorder %s85_s26, %s2952_s2  ;;  %p2957_p0 = scmp.lt.s32.totalorder %s85_s26, %s85_s26 }
  0xc6   :  { %p2958_p1 = scmp.lt.s32.totalorder %s2956_s0, %s2952_s2 }
  0xc8   :  { %p2959_p2 = por %p2958_p1, %p2957_p0 }
  0xca   :  { %p2960_p3 = pnand %p2959_p2, %p2953_p13 }
  0xcc   :  { %2963 = shalt.err (!%p2960_p3)
}
  0xcd   :  { %87 = dma.hbm_to_vmem [thread:$0]  %s3705_s4, 16, %s85_s26, [#allocation9]  }
  0xce   :  { %s2964_s3 = scalar_lea.hbm %s3707_s6, 16 }
  0xcf   :  { %p2965_p4 = scmp.ne.s32.totalorder %s3707_s6, %s2964_s3  ;;  %p2968_p5 = scmp.lt.u32.totalorder %s2964_s3, %s3707_s6 }
  0xd1   :  { %p2970_p6 = pnand %p2968_p5, %p2965_p4 }
  0xd3   :  { %2973 = shalt.err (!%p2970_p6)
}
  0xd4   :  { %s2974_s22 = scalar_lea.vmem %s107_s18, 16  ;;  %s2978_s9 = scalar_lea.vmem %s107_s18, 32 }
  0xd5   :  { %p2975_p7 = scmp.ne.s32.totalorder %s107_s18, %s2974_s22  ;;  %p2979_p8 = scmp.lt.s32.totalorder %s107_s18, %s107_s18 }
  0xd6   :  { %p2980_p9 = scmp.lt.s32.totalorder %s2978_s9, %s2974_s22 }
  0xd8   :  { %p2981_p10 = por %p2980_p9, %p2979_p8 }
  0xda   :  { %p2982_p11 = pnand %p2981_p10, %p2975_p7 }
  0xdc   :  { %2985 = shalt.err (!%p2982_p11)
}
  0xdd   :  { %109 = dma.hbm_to_vmem [thread:$0]  %s3707_s6, 16, %s107_s18, [#allocation12]  }
  0xde   :  { %s3154_s24 = smov [#allocation16]   ;;  %s3155_s21 = smov [#allocation19]  }
  0xdf   :  { %s127_s15 = sshll.u32 %s3154_s24, 4  ;;  %s150_s19 = sshll.u32 %s3155_s21, 4  ;;  %s128_s15 = int_to_ptr.vmem [resolvable:$true] %s127_s15  ;;  %s151_s19 = int_to_ptr.vmem [resolvable:$true] %s150_s19 }
  0xe0   :  { %s2986_s2 = scalar_lea.hbm %s3709_s8, 2048 }
  0xe1   :  { %p2987_p12 = scmp.ne.s32.totalorder %s3709_s8, %s2986_s2  ;;  %p2990_p13 = scmp.lt.u32.totalorder %s2986_s2, %s3709_s8 }
  0xe3   :  { %p2992_p0 = pnand %p2990_p13, %p2987_p12 }
  0xe5   :  { %2995 = shalt.err (!%p2992_p0)
}
  0xe6   :  { %s2996_s6 = scalar_lea.vmem %s128_s15, 2048  ;;  %p3001_p2 = scmp.lt.s32.totalorder %s128_s15, %s128_s15 }
  0xe7   :  { %p2997_p1 = scmp.ne.s32.totalorder %s128_s15, %s2996_s6  ;;  %p3002_p3 = scmp.lt.s32.totalorder %s2996_s6, %s2996_s6 }
  0xe9   :  { %p3003_p4 = por %p3002_p3, %p3001_p2 }
  0xeb   :  { %p3004_p5 = pnand %p3003_p4, %p2997_p1 }
  0xed   :  { %3007 = shalt.err (!%p3004_p5)
}
  0xee   :  { %133 = dma.hbm_to_vmem [thread:$0]  %s3709_s8, 2048, %s128_s15, [#allocation15], %s3728_s27, %s3728_s27, %s3729_s13  }
  0xef   :  { %s3008_s25 = scalar_lea.hbm %s3711_s10, 64 }
  0xf0   :  { %p3009_p6 = scmp.ne.s32.totalorder %s3711_s10, %s3008_s25  ;;  %p3012_p7 = scmp.lt.u32.totalorder %s3008_s25, %s3711_s10 }
  0xf2   :  { %p3014_p8 = pnand %p3012_p7, %p3009_p6 }
  0xf4   :  { %3017 = shalt.err (!%p3014_p8)
}
  0xf5   :  { %s3018_s4 = scalar_lea.vmem %s151_s19, 64  ;;  %p3023_p10 = scmp.lt.s32.totalorder %s151_s19, %s151_s19 }
  0xf6   :  { %p3019_p9 = scmp.ne.s32.totalorder %s151_s19, %s3018_s4  ;;  %p3024_p11 = scmp.lt.s32.totalorder %s3018_s4, %s3018_s4 }
  0xf8   :  { %p3025_p12 = por %p3024_p11, %p3023_p10 }
  0xfa   :  { %p3026_p13 = pnand %p3025_p12, %p3019_p9 }
  0xfc   :  { %3029 = shalt.err (!%p3026_p13)
}
  0xfd   :  { %153 = dma.hbm_to_vmem [thread:$0]  %s3711_s10, 64, %s151_s19, [#allocation18]  }
  0xfe   :  { %s3156_s13 = smov [#allocation22]   ;;  %s3157_s24 = smov [#allocation25]  }
  0xff   :  { %s170_s26 = sshll.u32 %s3156_s13, 4  ;;  %s190_s15 = sshll.u32 %s3157_s24, 4  ;;  %s171_s26 = int_to_ptr.vmem [resolvable:$true] %s170_s26  ;;  %s191_s15 = int_to_ptr.vmem [resolvable:$true] %s190_s15 }
 0x100   :  { %s3030_s7 = scalar_lea.hbm %s3713_s12, 16 }
 0x101   :  { %p3031_p0 = scmp.ne.s32.totalorder %s3713_s12, %s3030_s7  ;;  %p3034_p1 = scmp.lt.u32.totalorder %s3030_s7, %s3713_s12 }
 0x103   :  { %p3036_p2 = pnand %p3034_p1, %p3031_p0 }
 0x105   :  { %3039 = shalt.err (!%p3036_p2)
}
 0x106   :  { %s3040_s10 = scalar_lea.vmem %s171_s26, 16  ;;  %s3044_s19 = scalar_lea.vmem %s171_s26, 32 }
 0x107   :  { %p3041_p3 = scmp.ne.s32.totalorder %s171_s26, %s3040_s10  ;;  %p3045_p4 = scmp.lt.s32.totalorder %s171_s26, %s171_s26 }
 0x108   :  { %p3046_p5 = scmp.lt.s32.totalorder %s3044_s19, %s3040_s10 }
 0x10a   :  { %p3047_p6 = por %p3046_p5, %p3045_p4 }
 0x10c   :  { %p3048_p7 = pnand %p3047_p6, %p3041_p3 }
 0x10e   :  { %3051 = shalt.err (!%p3048_p7)
}
 0x10f   :  { %173 = dma.hbm_to_vmem [thread:$0]  %s3713_s12, 16, %s171_s26, [#allocation21]  }
 0x110   :  { %s3052_s3 = scalar_lea.hbm %s3715_s14, 16 }
 0x111   :  { %p3053_p8 = scmp.ne.s32.totalorder %s3715_s14, %s3052_s3  ;;  %p3056_p9 = scmp.lt.u32.totalorder %s3052_s3, %s3715_s14 }
 0x113   :  { %p3058_p10 = pnand %p3056_p9, %p3053_p8 }
 0x115   :  { %3061 = shalt.err (!%p3058_p10)
}
 0x116   :  { %s3062_s22 = scalar_lea.vmem %s191_s15, 16  ;;  %s3066_s9 = scalar_lea.vmem %s191_s15, 32 }
 0x117   :  { %p3063_p11 = scmp.ne.s32.totalorder %s191_s15, %s3062_s22  ;;  %p3067_p12 = scmp.lt.s32.totalorder %s191_s15, %s191_s15 }
 0x118   :  { %p3068_p13 = scmp.lt.s32.totalorder %s3066_s9, %s3062_s22 }
 0x11a   :  { %p3069_p0 = por %p3068_p13, %p3067_p12 }
 0x11c   :  { %p3070_p1 = pnand %p3069_p0, %p3063_p11 }
 0x11e   :  { %3073 = shalt.err (!%p3070_p1)
}
 0x11f   :  { %193 = dma.hbm_to_vmem [thread:$0]  %s3715_s14, 16, %s191_s15, [#allocation24]  }
 0x120   :  { %s3158_s8 = smov [#allocation28]   ;;  %s3074_s24 = scalar_lea.hbm %s3717_s16, 16 }
 0x121   :  { %s212_s27 = sshll.u32 %s3158_s8, 4  ;;  %p3075_p2 = scmp.ne.s32.totalorder %s3717_s16, %s3074_s24  ;;  %s213_s27 = int_to_ptr.vmem [resolvable:$true] %s212_s27 }
 0x122   :  { %p3078_p3 = scmp.lt.u32.totalorder %s3074_s24, %s3717_s16 }
 0x124   :  { %p3080_p4 = pnand %p3078_p3, %p3075_p2 }
 0x126   :  { %3083 = shalt.err (!%p3080_p4)
}
 0x127   :  { %s3084_s0 = scalar_lea.vmem %s213_s27, 16  ;;  %s3088_s14 = scalar_lea.vmem %s213_s27, 32 }
 0x128   :  { %p3085_p5 = scmp.ne.s32.totalorder %s213_s27, %s3084_s0  ;;  %p3089_p6 = scmp.lt.s32.totalorder %s213_s27, %s213_s27 }
 0x129   :  { %p3090_p7 = scmp.lt.s32.totalorder %s3088_s14, %s3084_s0 }
 0x12b   :  { %p3091_p8 = por %p3090_p7, %p3089_p6 }
 0x12d   :  { %p3092_p9 = pnand %p3091_p8, %p3085_p5 }
 0x12f   :  { %3095 = shalt.err (!%p3092_p9)
}
 0x130   :  { %215 = dma.hbm_to_vmem [thread:$0]  %s3717_s16, 16, %s213_s27, [#allocation27]  }
 0x131   :  { %3118 = dma.done.wait [#allocation3], 128  }
 0x132   :  { %3119 = vsyncadd [#allocation3], 4294967168 }
 0x133   :  { %3120 = dma.done.wait [#allocation6], 256  }
 0x134   :  { %3121 = vsyncadd [#allocation6], 4294967040 }
 0x135   :  { %3122 = dma.done.wait [#allocation9], 32  }
 0x136   :  { %3123 = vsyncadd [#allocation9], 4294967264 }
 0x137   :  { %3124 = dma.done.wait [#allocation12], 1040  }
 0x138   :  { %3125 = vsyncadd [#allocation12], 4294966256 }
 0x139   :  { %3126 = dma.done.wait [#allocation15], 4096  }
 0x13a   :  { %3127 = vsyncadd [#allocation15], 4294963200 }
 0x13b   :  { %3128 = dma.done.wait [#allocation18], 128  }
 0x13c   :  { %3129 = vsyncadd [#allocation18], 4294967168 }
 0x13d   :  { %3130 = dma.done.wait [#allocation21], 80  }
 0x13e   :  { %3131 = vsyncadd [#allocation21], 4294967216 }
 0x13f   :  { %3132 = dma.done.wait [#allocation24], 32  }
 0x140   :  { %3133 = vsyncadd [#allocation24], 4294967264 }
 0x141   :  { %3134 = dma.done.wait [#allocation27], 4112  }
 0x142   :  { %3135 = vsyncadd [#allocation27], 4294963184  ;;  %v3159_v0 = vmov 0.0   ;;  %vm3160_vm0 = vmmov 0   ;;  %v2631_v1 = vld [vmem:[#allocation11] sm:$0xff]   ;;  %v2632_v2 = vld [vmem:[#allocation11 + $0x8] sm:$0xff]  }
 0x143   :  { %2417 = vmatprep.subr.bf16.mxu0 %v3159_v0  ;;  %2433 = vmatprep.mubr.msk.bf16.mxu0 %vm3160_vm0, %v3159_v0  ;;  %v2633_v3 = vld [vmem:[#allocation11 + $0x10] sm:$0xff]   ;;  %v2634_v4 = vld [vmem:[#allocation11 + $0x18] sm:$0xff]   ;;  %v2642_v6 = vld [vmem:[#allocation14] ss:$8 sps:$4 sm:$0xff]   ;;  %v3161_v26 = vmov 0   ;;  %vm545_vm1 = vcmask 130048  }
 0x144   :  { %2418 = vmatpush3.bf16.msra.mxu0 %v2631_v1  ;;  %v2640_v5 = vld [vmem:[#allocation14 + $0x4] ss:$8 sps:$4 sm:$0xff]   ;;  %v2643_v7 = vld [vmem:[#allocation14 + $0x14] ss:$8 sps:$4 sm:$0xff]   ;;  %v2645_v8 = vld [vmem:[#allocation14 + $0x10] ss:$8 sps:$4 sm:$0xff]   ;;  %523 = vmatprep.mubr.bf16.mxu1 %v3161_v26 }
 0x145   :  { %2419 = vmatprep.subr.bf16.mxu0 %v3159_v0  ;;  %491 = vmatprep.subr.bf16.mxu1 %v2640_v5  ;;  %v2646_v9 = vld [vmem:[#allocation14 + $0x24] ss:$8 sps:$4 sm:$0xff]   ;;  %v2648_v12 = vld [vmem:[#allocation14 + $0x20] ss:$8 sps:$4 sm:$0xff]   ;;  %v2649_v13 = vld [vmem:[#allocation14 + $0x34] ss:$8 sps:$4 sm:$0xff]  }
 0x146   :  { %492 = vmatpush1.bf16.msra.mxu1 %v2642_v6  ;;  %v2635_v10 = vld [vmem:[#allocation11 + $0x20] sm:$0xff]   ;;  %v2636_v11 = vld [vmem:[#allocation11 + $0x28] sm:$0xff]   ;;  %v2651_v14 = vld [vmem:[#allocation14 + $0x30] ss:$8 sps:$4 sm:$0xff]   ;;  %v3162_v42 = vmov 0.0|0.0   ;;  %s3163_s16 = smov [#allocation29]  }
 0x147   :  { %493 = vmatprep.subr.bf16.mxu1 %v2643_v7  ;;  %v2652_v15 = vld [vmem:[#allocation14 + $0x44] ss:$8 sps:$4 sm:$0xff]   ;;  %v2654_v17 = vld [vmem:[#allocation14 + $0x40] ss:$8 sps:$4 sm:$0xff]   ;;  %v2655_v18 = vld [vmem:[#allocation14 + $0x54] ss:$8 sps:$4 sm:$0xff]  }
 0x148   :  { %2420 = vmatpush3.bf16.msra.mxu0 %v2632_v2  ;;  %v2637_v16 = vld [vmem:[#allocation11 + $0x30] sm:$0xff]   ;;  %v2638_v19 = vld [vmem:[#allocation11 + $0x38] sm:$0xff]   ;;  %v2639_v21 = vld [vmem:[#allocation2] sm:$0xff]   ;;  %s2184_s1 = sshll.u32 %s3163_s16, 4  ;;  %s2185_s1 = int_to_ptr.vmem [resolvable:$true] %s2184_s1 }
 0x149   :  { %2421 = vmatprep.subr.bf16.mxu0 %v3159_v0  ;;  %v2657_v20 = vld [vmem:[#allocation14 + $0x50] ss:$8 sps:$4 sm:$0xff]   ;;  %v2658_v22 = vld [vmem:[#allocation14 + $0x64] ss:$8 sps:$4 sm:$0xff]   ;;  %v2660_v23 = vld [vmem:[#allocation14 + $0x60] ss:$8 sps:$4 sm:$0xff]   ;;  %p3101_p11 = scmp.lt.s32.totalorder %s2185_s1, %s2185_s1 }
 0x14a   :  { %494 = vmatpush1.bf16.msra.mxu1 %v2645_v8  ;;  %v2661_v24 = vld [vmem:[#allocation14 + $0x74] ss:$8 sps:$4 sm:$0xff]   ;;  %v2663_v25 = vld [vmem:[#allocation14 + $0x70] ss:$8 sps:$4 sm:$0xff]   ;;  %v2227_v43 = vld [vmem:[#allocation17] ss:$0 sm:$0xff] }
 0x14b   :  { %495 = vmatprep.subr.bf16.mxu1 %v2646_v9  ;;  %v2201_v27 = vld [vmem:[#allocation13] ss:$0 sm:$0xff]  ;;  %v3532_v41 = vld [vmem:[#allocation5] sm:$0xff]   ;;  %v3540_v53 = vld [vmem:[#allocation10] sm:$0x1]  ;;  %s3096_s10 = scalar_lea.vmem %s2185_s1, 32 }
 0x14c   :  { %2422 = vmatpush3.bf16.msra.mxu0 %v2633_v3  ;;  %v2665_v55 = vld [vmem:[#allocation16] sm:$0xff]   ;;  %v2666_v56 = vld [vmem:[#allocation16 + $0x8] sm:$0xff]   ;;  %v2667_v57 = vld [vmem:[#allocation16 + $0x10] sm:$0xff]   ;;  %v739_v3 = vlaneseq  ;;  %p3097_p10 = scmp.ne.s32.totalorder %s2185_s1, %s3096_s10  ;;  %p3102_p12 = scmp.lt.s32.totalorder %s3096_s10, %s3096_s10 }
 0x14d   :  { %2423 = vmatprep.subr.bf16.mxu0 %v3159_v0  ;;  %v2668_v58 = vld [vmem:[#allocation16 + $0x18] sm:$0xff]   ;;  %v2669_v59 = vld [vmem:[#allocation16 + $0x20] sm:$0xff]   ;;  %v2670_v60 = vld [vmem:[#allocation16 + $0x28] sm:$0xff]  }
 0x14e   :  { %496 = vmatpush1.bf16.msra.mxu1 %v2648_v12  ;;  %v2671_v61 = vld [vmem:[#allocation16 + $0x30] sm:$0xff]   ;;  %v2672_v62 = vld [vmem:[#allocation16 + $0x38] sm:$0xff]   ;;  %v740_v8 = vshrl.u32 %v739_v3, 7  ;;  %p3103_p13 = por %p3102_p12, %p3101_p11 }
 0x14f   :  { %497 = vmatprep.subr.bf16.mxu1 %v2649_v13 }
 0x150   :  { %2424 = vmatpush3.bf16.msra.mxu0 %v2634_v4  ;;  %v3560_v9 = vsub.s32 0, %v740_v8  ;;  %p3104_p0 = pnand %p3103_p13, %p3097_p10 }
 0x151   :  { %2425 = vmatprep.subr.bf16.mxu0 %v3159_v0 }
 0x152   :  { %498 = vmatpush1.bf16.msra.mxu1 %v2651_v14 }
 0x153   :  { %499 = vmatprep.subr.bf16.mxu1 %v2652_v15  ;;  %v2232_v15 = vld [vmem:[#allocation19] ss:$0 sm:$0xff] }
 0x154   :  { %2426 = vmatpush3.bf16.msra.mxu0 %v2635_v10 }
 0x155   :  { %2427 = vmatprep.subr.bf16.mxu0 %v3159_v0 }
 0x156   :  { %500 = vmatpush1.bf16.msra.mxu1 %v2654_v17 }
 0x157   :  { %501 = vmatprep.subr.bf16.mxu1 %v2655_v18  ;;  %v2233_v18 = vld [vmem:[#allocation20] ss:$0 sm:$0xff] }
 0x158   :  { %2428 = vmatpush3.bf16.msra.mxu0 %v2636_v11 }
 0x159   :  { %2429 = vmatprep.subr.bf16.mxu0 %v3159_v0 }
 0x15a   :  { %502 = vmatpush1.bf16.msra.mxu1 %v2657_v20 }
 0x15b   :  { %503 = vmatprep.subr.bf16.mxu1 %v2658_v22 }
 0x15c   :  { %2430 = vmatpush3.bf16.msra.mxu0 %v2637_v16 }
 0x15d   :  { %2431 = vmatprep.subr.bf16.mxu0 %v3159_v0 }
 0x15e   :  { %504 = vmatpush1.bf16.msra.mxu1 %v2660_v23 }
 0x15f   :  { %505 = vmatprep.subr.bf16.mxu1 %v2661_v24 }
 0x160   :  { %2432 = vmatpush3.bf16.msra.mxu0 %v2638_v19 }
 0x161   :  { %2437 = vmatprep.subr.bf16.mxu0 %v3159_v0 }
 0x162   :  { %506 = vmatpush1.bf16.msra.mxu1 %v2663_v25 }
 0x163   :  { %2434 = vmatmul.mubr.bf16.vlgmr.msra.gmra.mrb[0].mxu0 %v2639_v21  ;;  %2581 = vmatprep.subr.bf16.mxu1 %v3162_v42 }
 0x164   :  { %2439 = vmatprep.mubr.msk.bf16.mxu0 %vm3160_vm0, %v3159_v0 }
 0x236   :  { %v387_v28 = vpop.f32.mrb[0].mxu0 }
 0x237   :  { %v2435_v29 = vpop.f32.mrb[1].mxu0  ;;  %v3518_v31 = vadd.f32 %v2201_v27, %v387_v28  ;;  %v3572_v28 = vld [vmem:[#allocation8] sm:$0x1] }
 0x238   :  { %v390_v30 = vpop.f32.mrb[2].mxu0 }
 0x239   :  { %v3520_v32 = vadd.f32 %v2201_v27, %v390_v30  ;;  %v2436_v33 = vpop.f32.mrb[3].mxu0 }
 0x23b   :  { %v394_v34 = vpack.c.bf16 %v3520_v32, %v3518_v31 }
 0x23d   :  { %524 = vmatmul.mubr.bf16.vlgmr.msra.gmra.mrb[0].mxu1 %v394_v34 }
 0x23e   :  { %2447 = vmatprep.mubr.msk.f32.mxu1 %vm3160_vm0, %v3159_v0 }
 0x310   :  { %v525_v35 = vpop.f32.mrb[0].mxu1 }
 0x311   :  { %v3526_v36 = vpop.f32.mrb[1].mxu1 }
 0x312   :  { %v529_v37 = vpop.f32.mrb[2].mxu1 }
 0x313   :  { %v534_v38 = vpack.c.bf16 %v529_v37, %v525_v35  ;;  %v3528_v39 = vpop.f32.mrb[3].mxu1 }
 0x314   :  { %v1552_v40 = vpack.c.bf16 %v3528_v39, %v3526_v36 }
 0x315   :  { %2438 = vmatpush3.bf16.msra.mxu0 %v534_v38 }
 0x316   :  { %2457 = vmatprep.subr.bf16.mxu0 %v3159_v0 }
 0x318   :  { %2440 = vmatmul.mubr.msk.bf16.vlgmr.msra.gmra.mrb[4].mxu0 %vm545_vm1, %v3532_v41 }
 0x319   :  { %2459 = vmatprep.mubr.msk.bf16.mxu0 %vm3160_vm0, %v3159_v0 }
 0x3eb   :  { %v583_v44 = vpop.f32.mrb[4].mxu0 }
 0x3ec   :  { %v2441_v45 = vpop.f32.mrb[5].mxu0  ;;  %v584_v47 = vadd.f32 %v2227_v43, %v583_v44 }
 0x3ed   :  { %v586_v46 = vpop.f32.mrb[6].mxu0  ;;  %v2243_v45 = vld [vmem:[#allocation17 + $0x1] ss:$0 sm:$0xff] }
 0x3ee   :  { %v587_v48 = vadd.f32 %v2227_v43, %v586_v46  ;;  %v2442_v49 = vpop.f32.mrb[7].mxu0  ;;  %v665_v52 = vmul.f32 %v584_v47, %v584_v47 }
 0x3f0   :  { %v2582_v50 = vpack.c.bf16 %v587_v48, %v584_v47  ;;  %v666_v51 = vmul.f32 %v587_v48, %v587_v48 }
 0x3f2   :  { %2583 = vmatpush3.bf16.msra.mxu1 %v2582_v50  ;;  %v2585_v54 = vpack.c.bf16 %v666_v51, %v665_v52 }
 0x3f3   :  { %2584 = vmatprep.subr.bf16.mxu1 %v3162_v42 }
 0x3f5   :  { %2448 = vmatmul.mubr.msk.f32.vlgmr.msra.gmra.mrb[4].mxu1 %vm545_vm1, %v3540_v53 }
 0x3f6   :  { %2586 = vmatpush3.bf16.msra.mxu1 %v2585_v54  ;;  %2454 = vmatprep.mubr.msk.f32.mxu1 %vm3160_vm0, %v3159_v0 }
 0x3f7   :  { %2463 = vmatprep.subr.bf16.mxu1 %v3159_v0 }
 0x3f9   :  { %2455 = vmatmul.mubr.msk.f32.vlgmr.msra.gmra.mrb[6].mxu1 %vm545_vm1, %v3540_v53 }
 0x3fa   :  { %2479 = vmatprep.mubr.msk.bf16.mxu1 %vm3160_vm0, %v3159_v0  ;;  %2464 = vmatpush3.bf16.msra.mxu1 %v2665_v55 }
 0x3fb   :  { %2465 = vmatprep.subr.bf16.mxu1 %v3159_v0 }
 0x3fe   :  { %2466 = vmatpush3.bf16.msra.mxu1 %v2666_v56 }
 0x3ff   :  { %2467 = vmatprep.subr.bf16.mxu1 %v3159_v0 }
 0x402   :  { %2468 = vmatpush3.bf16.msra.mxu1 %v2667_v57 }
 0x403   :  { %2469 = vmatprep.subr.bf16.mxu1 %v3159_v0 }
 0x406   :  { %2470 = vmatpush3.bf16.msra.mxu1 %v2668_v58 }
 0x407   :  { %2471 = vmatprep.subr.bf16.mxu1 %v3159_v0 }
 0x40a   :  { %2472 = vmatpush3.bf16.msra.mxu1 %v2669_v59 }
 0x40b   :  { %2473 = vmatprep.subr.bf16.mxu1 %v3159_v0 }
 0x40e   :  { %2474 = vmatpush3.bf16.msra.mxu1 %v2670_v60 }
 0x40f   :  { %2475 = vmatprep.subr.bf16.mxu1 %v3159_v0 }
 0x412   :  { %2476 = vmatpush3.bf16.msra.mxu1 %v2671_v61 }
 0x413   :  { %2477 = vmatprep.subr.bf16.mxu1 %v3159_v0 }
 0x416   :  { %2478 = vmatpush3.bf16.msra.mxu1 %v2672_v62 }
 0x417   :  { %2529 = vmatprep.subr.bf16.mxu1 %v3159_v0 }
 0x4c8   :  { %v661_v63 = vpop.f32.mrb[4].mxu1 }
 0x4c9   :  { %v2449_v1 = vpop.f32.mrb[5].mxu1  ;;  %v737_v2 = vmul.f32 %v661_v63, %v661_v63  ;;  %v742_v10 = vrot.slane %v661_v63, %v3560_v9 }
 0x4cb   :  { %v743_v12 = vsub.f32 %v584_v47, %v742_v10  ;;  %v744_v13 = vsub.f32 %v587_v48, %v742_v10  ;;  %v2248_v10 = vld [vmem:[#allocation20 + $0x1] ss:$0 sm:$0xff] }
 0x4cc   :  { %v733_v4 = vpop.f32.mrb[6].mxu1 }
 0x4cd   :  { %v738_v5 = vsub.f32 %v733_v4, %v737_v2  ;;  %v2456_v6 = vpop.f32.mrb[7].mxu1 }
 0x4ce   :  { %v2247_v6 = vld [vmem:[#allocation19 + $0x1] ss:$0 sm:$0xff] }
 0x4cf   :  { %v745_v7 = vadd.f32 1e-05, %v738_v5 }
 0x4d1   :  { %2714 = vrsqrt.f32 %v745_v7 }
 0x4db   :  { %v2715_v11 = vpop.eup %2714 }
 0x4dc   :  { %v750_v14 = vrot.slane %v2715_v11, %v3560_v9 }
 0x4de   :  { %v751_v16 = vmul.f32 %v750_v14, %v743_v12  ;;  %v752_v17 = vmul.f32 %v750_v14, %v744_v13 }
 0x4e0   :  { %v757_v19 = vmul.f32 %v2232_v15, %v751_v16  ;;  %v758_v20 = vmul.f32 %v2232_v15, %v752_v17 }
 0x4e2   :  { %v763_v21 = vadd.f32 %v2233_v18, %v757_v19  ;;  %v764_v22 = vadd.f32 %v2233_v18, %v758_v20  ;;  %v2673_v20 = vld [vmem:[#allocation16 + $0x40] sm:$0xff]  }
 0x4e4   :  { %v765_v23 = vmax.f32 %v763_v21, 0.0  ;;  %v766_v24 = vmax.f32 %v764_v22, 0.0  ;;  %v2674_v21 = vld [vmem:[#allocation16 + $0x48] sm:$0xff]   ;;  %v2675_v22 = vld [vmem:[#allocation16 + $0x50] sm:$0xff]  }
 0x4e6   :  { %v3565_v25 = vadd.f32 %v765_v23, %v3518_v31  ;;  %v3568_v26 = vadd.f32 %v766_v24, %v3520_v32  ;;  %v2676_v23 = vld [vmem:[#allocation16 + $0x58] sm:$0xff]   ;;  %v2677_v24 = vld [vmem:[#allocation16 + $0x60] sm:$0xff]  }
 0x4e8   :  { %v769_v27 = vpack.c.bf16 %v3568_v26, %v3565_v25 }
 0x4ea   :  { %2458 = vmatpush3.bf16.msra.mxu0 %v769_v27  ;;  %2480 = vmatmul.mubr.bf16.vlgmr.msra.gmra.mrb[8].mxu1 %v769_v27  ;;  %v2680_v27 = vld [vmem:[#allocation16 + $0x78] sm:$0xff]  }
 0x4eb   :  { %2483 = vmatprep.subr.bf16.mxu0 %v3159_v0  ;;  %2531 = vmatprep.mubr.msk.bf16.mxu1 %vm3160_vm0, %v3159_v0 }
 0x4ed   :  { %2460 = vmatmul.mubr.msk.bf16.vlgmr.msra.gmra.mrb[8].mxu0 %vm545_vm1, %v3572_v28 }
 0x4ee   :  { %2485 = vmatprep.mubr.msk.bf16.mxu0 %vm3160_vm0, %v3159_v0 }
 0x5bd   :  { %v911_v29 = vpop.f32.mrb[8].mxu1 }
 0x5be   :  { %v2481_v30 = vpop.f32.mrb[9].mxu1 }
 0x5bf   :  { %v914_v33 = vpop.f32.mrb[10].mxu1 }
 0x5c0   :  { %v918_v34 = vpack.c.bf16 %v914_v33, %v911_v29  ;;  %v2482_v35 = vpop.f32.mrb[11].mxu1  ;;  %v3581_v37 = vpop.f32.mrb[8].mxu0 }
 0x5c1   :  { %v2461_v38 = vpop.f32.mrb[9].mxu0 }
 0x5c2   :  { %2484 = vmatpush3.bf16.msra.mxu0 %v918_v34  ;;  %v810_v43 = vpop.f32.mrb[10].mxu0 }
 0x5c3   :  { %v2462_v44 = vpop.f32.mrb[11].mxu0  ;;  %2587 = vmatprep.subr.bf16.mxu0 %v3162_v42 }
 0x5c5   :  { %2486 = vmatmul.mubr.msk.bf16.vlgmr.msra.gmra.mrb[12].mxu0 %vm545_vm1, %v3532_v41 }
 0x5c6   :  { %2493 = vmatprep.mubr.msk.f32.mxu0 %vm3160_vm0, %v3159_v0 }
 0x698   :  { %v958_v46 = vpop.f32.mrb[12].mxu0 }
 0x699   :  { %v2487_v47 = vpop.f32.mrb[13].mxu0  ;;  %v959_v49 = vadd.f32 %v2243_v45, %v958_v46  ;;  %v2258_v46 = vld [vmem:[#allocation17 + $0x2] ss:$0 sm:$0xff] }
 0x69a   :  { %v961_v48 = vpop.f32.mrb[14].mxu0 }
 0x69b   :  { %v962_v50 = vadd.f32 %v2243_v45, %v961_v48  ;;  %v2488_v51 = vpop.f32.mrb[15].mxu0  ;;  %v1037_v55 = vmul.f32 %v959_v49, %v959_v49 }
 0x69d   :  { %v2588_v52 = vpack.c.bf16 %v962_v50, %v959_v49  ;;  %v1038_v54 = vmul.f32 %v962_v50, %v962_v50 }
 0x69f   :  { %2589 = vmatpush3.bf16.msra.mxu0 %v2588_v52  ;;  %v2591_v56 = vpack.c.bf16 %v1038_v54, %v1037_v55 }
 0x6a0   :  { %2590 = vmatprep.subr.bf16.mxu0 %v3162_v42 }
 0x6a2   :  { %2494 = vmatmul.mubr.msk.f32.vlgmr.msra.gmra.mrb[16].mxu0 %vm545_vm1, %v3540_v53 }
 0x6a3   :  { %2592 = vmatpush3.bf16.msra.mxu0 %v2591_v56  ;;  %2500 = vmatprep.mubr.msk.f32.mxu0 %vm3160_vm0, %v3159_v0 }
 0x6a4   :  { %2503 = vmatprep.subr.bf16.mxu0 %v3159_v0 }
 0x6a6   :  { %2501 = vmatmul.mubr.msk.f32.vlgmr.msra.gmra.mrb[18].mxu0 %vm545_vm1, %v3540_v53 }
 0x6a7   :  { %2505 = vmatprep.mubr.msk.bf16.mxu0 %vm3160_vm0, %v3159_v0 }
 0x775   :  { %v1033_v57 = vpop.f32.mrb[16].mxu0 }
 0x776   :  { %v2495_v58 = vpop.f32.mrb[17].mxu0  ;;  %v1109_v59 = vmul.f32 %v1033_v57, %v1033_v57  ;;  %v1114_v1 = vrot.slane %v1033_v57, %v3560_v9 }
 0x778   :  { %v1115_v3 = vsub.f32 %v959_v49, %v1114_v1  ;;  %v1116_v4 = vsub.f32 %v962_v50, %v1114_v1 }
 0x779   :  { %v1105_v60 = vpop.f32.mrb[18].mxu0 }
 0x77a   :  { %v1110_v61 = vsub.f32 %v1105_v60, %v1109_v59  ;;  %v2502_v62 = vpop.f32.mrb[19].mxu0 }
 0x77c   :  { %v1117_v63 = vadd.f32 1e-05, %v1110_v61 }
 0x77e   :  { %2716 = vrsqrt.f32 %v1117_v63 }
 0x788   :  { %v2717_v2 = vpop.eup %2716 }
 0x789   :  { %v1122_v5 = vrot.slane %v2717_v2, %v3560_v9 }
 0x78b   :  { %v1123_v7 = vmul.f32 %v1122_v5, %v1115_v3  ;;  %v1124_v8 = vmul.f32 %v1122_v5, %v1116_v4 }
 0x78d   :  { %v1129_v11 = vmul.f32 %v2247_v6, %v1123_v7  ;;  %v1130_v12 = vmul.f32 %v2247_v6, %v1124_v8  ;;  %v2262_v6 = vld [vmem:[#allocation19 + $0x2] ss:$0 sm:$0xff] }
 0x78f   :  { %v1135_v13 = vadd.f32 %v2248_v10, %v1129_v11  ;;  %v1136_v14 = vadd.f32 %v2248_v10, %v1130_v12  ;;  %v2263_v10 = vld [vmem:[#allocation20 + $0x2] ss:$0 sm:$0xff] }
 0x791   :  { %v1137_v15 = vmax.f32 %v1135_v13, 0.0  ;;  %v1138_v16 = vmax.f32 %v1136_v14, 0.0 }
 0x793   :  { %v3601_v17 = vadd.f32 %v1137_v15, %v3565_v25  ;;  %v3604_v18 = vadd.f32 %v1138_v16, %v3568_v26  ;;  %v2678_v25 = vld [vmem:[#allocation16 + $0x68] sm:$0xff]   ;;  %v2679_v26 = vld [vmem:[#allocation16 + $0x70] sm:$0xff]  }
 0x795   :  { %v1141_v19 = vpack.c.bf16 %v3604_v18, %v3601_v17 }
 0x797   :  { %2504 = vmatpush3.bf16.msra.mxu0 %v1141_v19 }
 0x798   :  { %2509 = vmatprep.subr.bf16.mxu0 %v3159_v0 }
 0x79a   :  { %2506 = vmatmul.mubr.msk.bf16.vlgmr.msra.gmra.mrb[20].mxu0 %vm545_vm1, %v3572_v28 }
 0x79b   :  { %2510 = vmatpush3.bf16.msra.mxu0 %v2673_v20  ;;  %2525 = vmatprep.mubr.msk.bf16.mxu0 %vm3160_vm0, %v3159_v0 }
 0x79c   :  { %2511 = vmatprep.subr.bf16.mxu0 %v3159_v0 }
 0x79f   :  { %2512 = vmatpush3.bf16.msra.mxu0 %v2674_v21 }
 0x7a0   :  { %2513 = vmatprep.subr.bf16.mxu0 %v3159_v0 }
 0x7a3   :  { %2514 = vmatpush3.bf16.msra.mxu0 %v2675_v22  ;;  %v2681_v22 = vld [vmem:[#allocation7] sm:$0xff]  }
 0x7a4   :  { %2515 = vmatprep.subr.bf16.mxu0 %v3159_v0 }
 0x7a7   :  { %2516 = vmatpush3.bf16.msra.mxu0 %v2676_v23 }
 0x7a8   :  { %2517 = vmatprep.subr.bf16.mxu0 %v3159_v0 }
 0x7ab   :  { %2518 = vmatpush3.bf16.msra.mxu0 %v2677_v24 }
 0x7ac   :  { %2519 = vmatprep.subr.bf16.mxu0 %v3159_v0 }
 0x7af   :  { %2520 = vmatpush3.bf16.msra.mxu0 %v2678_v25  ;;  %v2265_v25 = vld [vmem:[#allocation22] ss:$0 sm:$0xff] }
 0x7b0   :  { %2521 = vmatprep.subr.bf16.mxu0 %v3159_v0 }
 0x7b3   :  { %2522 = vmatpush3.bf16.msra.mxu0 %v2679_v26 }
 0x7b4   :  { %2523 = vmatprep.subr.bf16.mxu0 %v3159_v0 }
 0x7b7   :  { %2524 = vmatpush3.bf16.msra.mxu0 %v2680_v27 }
 0x7b8   :  { %2599 = vmatprep.subr.bf16.mxu0 %v3162_v42 }
 0x7ba   :  { %2526 = vmatmul.mubr.bf16.vlgmr.msra.gmra.mrb[24].mxu0 %v1141_v19 }
 0x7bb   :  { %2565 = vmatprep.mubr.msk.f32.mxu0 %vm3160_vm0, %v3159_v0 }
 0x86d   :  { %v3623_v29 = vpop.f32.mrb[20].mxu0 }
 0x86e   :  { %v2507_v30 = vpop.f32.mrb[21].mxu0 }
 0x86f   :  { %v1179_v33 = vpop.f32.mrb[22].mxu0 }
 0x870   :  { %v2508_v34 = vpop.f32.mrb[23].mxu0 }
 0x88d   :  { %v1281_v35 = vpop.f32.mrb[24].mxu0 }
 0x88e   :  { %v2527_v38 = vpop.f32.mrb[25].mxu0 }
 0x88f   :  { %v1284_v43 = vpop.f32.mrb[26].mxu0  ;;  %v2682_v38 = vld [vmem:[#allocation26 + $0x40] sm:$0xff]  }
 0x890   :  { %v1288_v44 = vpack.c.bf16 %v1284_v43, %v1281_v35  ;;  %v2528_v45 = vpop.f32.mrb[27].mxu0 }
 0x891   :  { %v2684_v45 = vld [vmem:[#allocation26 + $0x48] sm:$0xff]  }
 0x892   :  { %2530 = vmatpush3.bf16.msra.mxu1 %v1288_v44  ;;  %v2683_v44 = vld [vmem:[#allocation26] sm:$0xff]  }
 0x893   :  { %2593 = vmatprep.subr.bf16.mxu1 %v3162_v42 }
 0x895   :  { %2532 = vmatmul.mubr.msk.bf16.vlgmr.msra.gmra.mrb[12].mxu1 %vm545_vm1, %v3532_v41 }
 0x896   :  { %2539 = vmatprep.mubr.msk.f32.mxu1 %vm3160_vm0, %v3159_v0 }
 0x968   :  { %v1328_v47 = vpop.f32.mrb[12].mxu1 }
 0x969   :  { %v2533_v48 = vpop.f32.mrb[13].mxu1  ;;  %v1329_v50 = vadd.f32 %v2258_v46, %v1328_v47  ;;  %v2686_v47 = vld [vmem:[#allocation26 + $0x50] sm:$0xff]  }
 0x96a   :  { %v1331_v49 = vpop.f32.mrb[14].mxu1  ;;  %v2687_v48 = vld [vmem:[#allocation26 + $0x10] sm:$0xff]  }
 0x96b   :  { %v1332_v51 = vadd.f32 %v2258_v46, %v1331_v49  ;;  %v2534_v52 = vpop.f32.mrb[15].mxu1  ;;  %v1407_v56 = vmul.f32 %v1329_v50, %v1329_v50  ;;  %v1831_v46 = vpack.c.bf16 %v3623_v29, %v3623_v29  ;;  %v2688_v49 = vld [vmem:[#allocation26 + $0x58] sm:$0xff]   ;;  %v2692_v29 = vld [vmem:[#allocation26 + $0x68] sm:$0xff]  }
 0x96c   :  { %v2693_v52 = vld [vmem:[#allocation26 + $0x28] sm:$0xff]  }
 0x96d   :  { %v2594_v54 = vpack.c.bf16 %v1332_v51, %v1329_v50  ;;  %v1408_v55 = vmul.f32 %v1332_v51, %v1332_v51 }
 0x96f   :  { %2595 = vmatpush3.bf16.msra.mxu1 %v2594_v54  ;;  %v2597_v57 = vpack.c.bf16 %v1408_v55, %v1407_v56  ;;  %v2695_v54 = vld [vmem:[#allocation26 + $0x30] sm:$0xff]   ;;  %v2696_v55 = vld [vmem:[#allocation26 + $0x78] sm:$0xff]  }
 0x970   :  { %2596 = vmatprep.subr.bf16.mxu1 %v3162_v42  ;;  %v2697_v56 = vld [vmem:[#allocation26 + $0x38] sm:$0xff]  }
 0x972   :  { %2540 = vmatmul.mubr.msk.f32.vlgmr.msra.gmra.mrb[16].mxu1 %vm545_vm1, %v3540_v53 }
 0x973   :  { %2598 = vmatpush3.bf16.msra.mxu1 %v2597_v57  ;;  %2546 = vmatprep.mubr.msk.f32.mxu1 %vm3160_vm0, %v3159_v0  ;;  %v1830_v57 = vpack.c.bf16 %v3581_v37, %v3581_v37 }
 0x974   :  { %2549 = vmatprep.subr.bf16.mxu1 %v3159_v0 }
 0x976   :  { %2547 = vmatmul.mubr.msk.f32.vlgmr.msra.gmra.mrb[18].mxu1 %vm545_vm1, %v3540_v53 }
 0x977   :  { %2551 = vmatprep.mubr.msk.bf16.mxu1 %vm3160_vm0, %v3159_v0 }
 0xa45   :  { %v1403_v41 = vpop.f32.mrb[16].mxu1 }
 0xa46   :  { %v2541_v58 = vpop.f32.mrb[17].mxu1  ;;  %v1479_v59 = vmul.f32 %v1403_v41, %v1403_v41  ;;  %v1484_v1 = vrot.slane %v1403_v41, %v3560_v9 }
 0xa48   :  { %v1485_v3 = vsub.f32 %v1329_v50, %v1484_v1  ;;  %v1486_v4 = vsub.f32 %v1332_v51, %v1484_v1  ;;  %v2690_v50 = vld [vmem:[#allocation26 + $0x60] sm:$0xff]  }
 0xa49   :  { %v1475_v60 = vpop.f32.mrb[18].mxu1  ;;  %v2691_v51 = vld [vmem:[#allocation26 + $0x20] sm:$0xff]  }
 0xa4a   :  { %v1480_v61 = vsub.f32 %v1475_v60, %v1479_v59  ;;  %v2548_v62 = vpop.f32.mrb[19].mxu1 }
 0xa4c   :  { %v1487_v63 = vadd.f32 1e-05, %v1480_v61 }
 0xa4e   :  { %2718 = vrsqrt.f32 %v1487_v63 }
 0xa58   :  { %v2719_v2 = vpop.eup %2718 }
 0xa59   :  { %v1492_v5 = vrot.slane %v2719_v2, %v3560_v9 }
 0xa5b   :  { %v1493_v7 = vmul.f32 %v1492_v5, %v1485_v3  ;;  %v1494_v8 = vmul.f32 %v1492_v5, %v1486_v4 }
 0xa5d   :  { %v1499_v11 = vmul.f32 %v2262_v6, %v1493_v7  ;;  %v1500_v12 = vmul.f32 %v2262_v6, %v1494_v8  ;;  %v2270_v6 = vld [vmem:[#allocation23] ss:$0 sm:$0xff]  ;;  %v2271_v8 = vld [vmem:[#allocation25] ss:$0 sm:$0xff] }
 0xa5f   :  { %v1505_v13 = vadd.f32 %v2263_v10, %v1499_v11  ;;  %v1506_v14 = vadd.f32 %v2263_v10, %v1500_v12 }
 0xa61   :  { %v1507_v15 = vmax.f32 %v1505_v13, 0.0  ;;  %v1508_v16 = vmax.f32 %v1506_v14, 0.0 }
 0xa63   :  { %v1509_v19 = vadd.f32 %v1507_v15, %v3601_v17  ;;  %v1510_v20 = vadd.f32 %v1508_v16, %v3604_v18 }
 0xa65   :  { %v1511_v21 = vpack.c.bf16 %v1510_v20, %v1509_v19  ;;  %v2698_v20 = vld [vmem:[#allocation26 + $0xc0] sm:$0xff]  }
 0xa67   :  { %2550 = vmatpush3.bf16.msra.mxu1 %v1511_v21 }
 0xa68   :  { %2555 = vmatprep.subr.bf16.mxu1 %v3159_v0 }
 0xa6a   :  { %2552 = vmatmul.mubr.msk.bf16.vlgmr.msra.gmra.mrb[20].mxu1 %vm545_vm1, %v3572_v28 }
 0xa6b   :  { %2556 = vmatpush3.bf16.msra.mxu1 %v1552_v40  ;;  %2557 = vmatprep.mubr.msk.bf16.mxu1 %vm3160_vm0, %v3159_v0 }
 0xa6c   :  { %2575 = vmatprep.subr.bf16.mxu1 %v3159_v0 }
 0xa72   :  { %2558 = vmatmul.mubr.msk.bf16.vlgmr.msra.gmra.mrb[24].mxu1 %vm545_vm1, %v2681_v22  ;;  %v2699_v22 = vld [vmem:[#allocation26 + $0x80] sm:$0xff]  }
 0xa73   :  { %2577 = vmatprep.mubr.msk.bf16.mxu1 %vm3160_vm0, %v3159_v0 }
 0xb3d   :  { %v3656_v17 = vpop.f32.mrb[20].mxu1 }
 0xb3e   :  { %v2553_v18 = vpop.f32.mrb[21].mxu1 }
 0xb3f   :  { %v1549_v23 = vpop.f32.mrb[22].mxu1 }
 0xb40   :  { %v2554_v24 = vpop.f32.mrb[23].mxu1 }
 0xb45   :  { %v1602_v26 = vpop.f32.mrb[24].mxu1 }
 0xb46   :  { %v2559_v36 = vpop.f32.mrb[25].mxu1  ;;  %v3658_v40 = vadd.f32 %v2265_v25, %v1602_v26  ;;  %v2701_v26 = vld [vmem:[#allocation26 + $0x88] sm:$0xff]  }
 0xb47   :  { %v1605_v39 = vpop.f32.mrb[26].mxu1 }
 0xb48   :  { %v3660_v27 = vadd.f32 %v2265_v25, %v1605_v39  ;;  %v2560_v30 = vpop.f32.mrb[27].mxu1  ;;  %v1681_v35 = vmul.f32 %v3658_v40, %v3658_v40  ;;  %v2704_v39 = vld [vmem:[#allocation26 + $0xd8] sm:$0xff]  }
 0xb49   :  { %v2707_v30 = vld [vmem:[#allocation26 + $0xa0] sm:$0xff]  }
 0xb4a   :  { %v2600_v33 = vpack.c.bf16 %v3660_v27, %v3658_v40  ;;  %v1682_v34 = vmul.f32 %v3660_v27, %v3660_v27 }
 0xb4c   :  { %2601 = vmatpush3.bf16.msra.mxu0 %v2600_v33  ;;  %v2603_v43 = vpack.c.bf16 %v1682_v34, %v1681_v35  ;;  %v2709_v33 = vld [vmem:[#allocation26 + $0xa8] sm:$0xff]   ;;  %v2710_v34 = vld [vmem:[#allocation26 + $0xf0] sm:$0xff]  }
 0xb4d   :  { %2602 = vmatprep.subr.bf16.mxu0 %v3162_v42  ;;  %v2685_v42 = vld [vmem:[#allocation26 + $0x8] sm:$0xff]   ;;  %v2711_v35 = vld [vmem:[#allocation26 + $0xb0] sm:$0xff]  }
 0xb4f   :  { %2566 = vmatmul.mubr.msk.f32.vlgmr.msra.gmra.mrb[28].mxu0 %vm545_vm1, %v3540_v53 }
 0xb50   :  { %2604 = vmatpush3.bf16.msra.mxu0 %v2603_v43  ;;  %2572 = vmatprep.mubr.msk.f32.mxu0 %vm3160_vm0, %v3159_v0  ;;  %v2689_v0 = vld [vmem:[#allocation26 + $0x18] sm:$0xff]  }
 0xb51   :  { %2373 = vmatprep.subr.bf16.mxu0 %v2682_v38  ;;  %v2712_v38 = vld [vmem:[#allocation26 + $0xf8] sm:$0xff]  }
 0xb52   :  { %v2713_v43 = vld [vmem:[#allocation26 + $0xb8] sm:$0xff]  }
 0xb53   :  { %2573 = vmatmul.mubr.msk.f32.vlgmr.msra.gmra.mrb[30].mxu0 %vm545_vm1, %v3540_v53  ;;  %v2694_v53 = vld [vmem:[#allocation26 + $0x70] sm:$0xff]  }
 0xb54   :  { %2374 = vmatpush3.bf16.msra.mxu0 %v2683_v44  ;;  %2129 = vmatprep.mubr.bf16.mxu0 %v1831_v46 }
 0xb55   :  { %2375 = vmatprep.subr.bf16.mxu0 %v2684_v45 }
 0xb58   :  { %2376 = vmatpush3.bf16.msra.mxu0 %v2685_v42  ;;  %v1832_v42 = vpack.c.bf16 %v3656_v17, %v3656_v17 }
 0xb59   :  { %2377 = vmatprep.subr.bf16.mxu0 %v2686_v47 }
 0xb5c   :  { %2378 = vmatpush3.bf16.msra.mxu0 %v2687_v48 }
 0xb5d   :  { %2379 = vmatprep.subr.bf16.mxu0 %v2688_v49  ;;  %v2273_v49 = vld [vmem:[#allocation28] ss:$0 sm:$0xff] }
 0xb60   :  { %2380 = vmatpush3.bf16.msra.mxu0 %v2689_v0 }
 0xb61   :  { %2381 = vmatprep.subr.bf16.mxu0 %v2690_v50 }
 0xb64   :  { %2382 = vmatpush3.bf16.msra.mxu0 %v2691_v51 }
 0xb65   :  { %2383 = vmatprep.subr.bf16.mxu0 %v2692_v29 }
 0xb68   :  { %2384 = vmatpush3.bf16.msra.mxu0 %v2693_v52 }
 0xb69   :  { %2385 = vmatprep.subr.bf16.mxu0 %v2694_v53 }
 0xb6c   :  { %2386 = vmatpush3.bf16.msra.mxu0 %v2695_v54 }
 0xb6d   :  { %2387 = vmatprep.subr.bf16.mxu0 %v2696_v55 }
 0xb70   :  { %2388 = vmatpush3.bf16.msra.mxu0 %v2697_v56 }
 0xb73   :  { %2130 = vmatmul.mubr.bf16.vlgmr.msra.gmra.mrb[32].mxu0 %v1830_v57 }
 0xc22   :  { %v1677_v41 = vpop.f32.mrb[28].mxu0 }
 0xc23   :  { %v2567_v58 = vpop.f32.mrb[29].mxu0  ;;  %v1753_v59 = vmul.f32 %v1677_v41, %v1677_v41  ;;  %v1758_v1 = vrot.slane %v1677_v41, %v3560_v9 }
 0xc25   :  { %v1759_v3 = vsub.f32 %v3658_v40, %v1758_v1  ;;  %v1760_v4 = vsub.f32 %v3660_v27, %v1758_v1  ;;  %v2705_v40 = vld [vmem:[#allocation26 + $0x98] sm:$0xff]   ;;  %v2706_v27 = vld [vmem:[#allocation26 + $0xe0] sm:$0xff]  }
 0xc26   :  { %v1749_v60 = vpop.f32.mrb[30].mxu0 }
 0xc27   :  { %v1754_v61 = vsub.f32 %v1749_v60, %v1753_v59  ;;  %v2574_v62 = vpop.f32.mrb[31].mxu0 }
 0xc29   :  { %v1761_v63 = vadd.f32 1e-05, %v1754_v61 }
 0xc2b   :  { %2720 = vrsqrt.f32 %v1761_v63 }
 0xc35   :  { %v2721_v2 = vpop.eup %2720 }
 0xc36   :  { %v1766_v5 = vrot.slane %v2721_v2, %v3560_v9  ;;  %v2700_v9 = vld [vmem:[#allocation26 + $0xc8] sm:$0xff]  }
 0xc38   :  { %v1767_v37 = vmul.f32 %v1766_v5, %v1759_v3  ;;  %v1768_v7 = vmul.f32 %v1766_v5, %v1760_v4 }
 0xc3a   :  { %v1775_v10 = vmul.f32 %v2270_v6, %v1767_v37  ;;  %v1776_v11 = vmul.f32 %v2270_v6, %v1768_v7 }
 0xc3c   :  { %v1783_v12 = vadd.f32 %v2271_v8, %v1775_v10  ;;  %v1784_v13 = vadd.f32 %v2271_v8, %v1776_v11 }
 0xc3e   :  { %v1785_v14 = vmax.f32 %v1783_v12, 0.0  ;;  %v1786_v15 = vmax.f32 %v1784_v13, 0.0 }
 0xc40   :  { %v1787_v16 = vadd.f32 %v1785_v14, %v3518_v31  ;;  %v1788_v19 = vadd.f32 %v1786_v15, %v3520_v32  ;;  %v2702_v31 = vld [vmem:[#allocation26 + $0xd0] sm:$0xff]  }
 0xc41   :  { %v2703_v32 = vld [vmem:[#allocation26 + $0x90] sm:$0xff]  }
 0xc42   :  { %v1789_v21 = vpack.c.bf16 %v1788_v19, %v1787_v16 }
 0xc44   :  { %2576 = vmatpush3.bf16.msra.mxu1 %v1789_v21 }
 0xc45   :  { %2395 = vmatprep.subr.bf16.mxu1 %v2698_v20 }
 0xc46   :  { %v2389_v18 = vpop.f32.mrb[32].mxu0 }
 0xc47   :  { %2578 = vmatmul.mubr.msk.bf16.vlgmr.msra.gmra.mrb[28].mxu1 %vm545_vm1, %v3572_v28  ;;  %v2390_v23 = vpop.f32.mrb[33].mxu0  ;;  %v2708_v28 = vld [vmem:[#allocation26 + $0xe8] sm:$0xff]  }
 0xc48   :  { %v2391_v24 = vadd.f32 %v2390_v23, %v2389_v18  ;;  %v2392_v25 = vpop.f32.mrb[34].mxu0  ;;  %2396 = vmatpush3.bf16.msra.mxu1 %v2699_v22 }
 0xc49   :  { %v2393_v36 = vpop.f32.mrb[35].mxu0  ;;  %2397 = vmatprep.subr.bf16.mxu1 %v2700_v9 }
 0xc4a   :  { %v2132_v51 = vadd.f32 %v2391_v24, %v2273_v49 }
 0xc4c   :  { %2398 = vmatpush3.bf16.msra.mxu1 %v2701_v26 }
 0xc4d   :  { %2399 = vmatprep.subr.bf16.mxu1 %v2702_v31 }
 0xc50   :  { %2400 = vmatpush3.bf16.msra.mxu1 %v2703_v32 }
 0xc51   :  { %2401 = vmatprep.subr.bf16.mxu1 %v2704_v39 }
 0xc54   :  { %2402 = vmatpush3.bf16.msra.mxu1 %v2705_v40 }
 0xc55   :  { %2403 = vmatprep.subr.bf16.mxu1 %v2706_v27 }
 0xc58   :  { %2404 = vmatpush3.bf16.msra.mxu1 %v2707_v30 }
 0xc59   :  { %2405 = vmatprep.subr.bf16.mxu1 %v2708_v28 }
 0xc5c   :  { %2406 = vmatpush3.bf16.msra.mxu1 %v2709_v33 }
 0xc5d   :  { %2407 = vmatprep.subr.bf16.mxu1 %v2710_v34 }
 0xc60   :  { %2408 = vmatpush3.bf16.msra.mxu1 %v2711_v35 }
 0xc61   :  { %2409 = vmatprep.subr.bf16.mxu1 %v2712_v38 }
 0xc64   :  { %2410 = vmatpush3.bf16.msra.mxu1 %v2713_v43 }
 0xd1a   :  { %v1824_v44 = vpop.f32.mrb[28].mxu1 }
 0xd1b   :  { %v1833_v45 = vpack.c.bf16 %v1824_v44, %v1824_v44  ;;  %v2579_v46 = vpop.f32.mrb[29].mxu1 }
 0xd1c   :  { %v1827_v47 = vpop.f32.mrb[30].mxu1 }
 0xd1d   :  { %2169 = vmatprep.mubr.bf16.mxu1 %v1833_v45  ;;  %v2580_v48 = vpop.f32.mrb[31].mxu1 }
 0xd1e   :  { %2170 = vmatmul.mubr.bf16.vlgmr.msra.gmra.mrb[32].mxu1 %v1832_v42 }
 0xdf1   :  { %v2411_v0 = vpop.f32.mrb[32].mxu1 }
 0xdf2   :  { %v2412_v50 = vpop.f32.mrb[33].mxu1 }
 0xdf3   :  { %v2413_v29 = vadd.f32 %v2412_v50, %v2411_v0  ;;  %v2414_v52 = vpop.f32.mrb[34].mxu1 }
 0xdf4   :  { %v2415_v53 = vpop.f32.mrb[35].mxu1 }
 0xdf5   :  { %v2172_v54 = vadd.f32 %v2413_v29, %v2132_v51 }
 0xdf7   :  { %2177 = vst [vmem:[#allocation29] sm:$0x3] %v2172_v54 }
 0xdf8   :  { %3107 = shalt.err (!%p3104_p0)
}
 0xdf9   :  { %s3108_s6 = scalar_lea.hbm %s3718_s17, 32 }
 0xdfa   :  { %p3109_p1 = scmp.ne.s32.totalorder %s3718_s17, %s3108_s6  ;;  %p3112_p2 = scmp.lt.u32.totalorder %s3108_s6, %s3718_s17 }
 0xdfc   :  { %p3114_p3 = pnand %p3112_p2, %p3109_p1 }
 0xdfe   :  { %3117 = shalt.err (!%p3114_p3)
}
 0xdff   :  { %2187 = dma.vmem_to_hbm [thread:$0]  %s2185_s1, 32, %s3718_s17, [#allocation4]  }
 0xe00   :  { %3136 = dma.done.wait [#allocation4], 32  }
 0xe01   :  { %3137 = vsyncadd [#allocation4], 4294967264 }
 0xe02   :  { %2191 = vsyncpa [#allocation3], 1 }
 0xe03   :  { %2192 = vsyncpa [#allocation6], 1 }
 0xe04   :  { %2193 = vsyncpa [#allocation9], 1 }
 0xe05   :  { %2194 = vsyncpa [#allocation12], 1 }
 0xe06   :  { %2195 = vsyncpa [#allocation15], 1 }
 0xe07   :  { %2196 = vsyncpa [#allocation18], 1 }
 0xe08   :  { %2197 = vsyncpa [#allocation21], 1 }
 0xe09   :  { %2198 = vsyncpa [#allocation24], 1 }
 0xe0a   :  { %2199 = vsyncpa [#allocation27], 1 }
 0xe0b   :  { %2200 = vsyncpa [#allocation4], 1 }

</bundles_post_ra>
